<compile_context>
chip_gen: v7x
topology: tpu7x:2x2x1
jax: 0.10.0
libtpu: 0.0.40
codegen_flags: <defaults>
</compile_context>

<pallas_src>
import functools

import jax
import jax.numpy as jnp
from jax.experimental import pallas as pl
from jax.experimental.pallas import tpu as pltpu


def _round_up(n: int, m: int) -> int:
    return ((n + m - 1) // m) * m


# ----------------------------- kernels -------------------------------------

def autoencoder_kernel(x_ref,
                       w1_ref, b1_ref,   # encoder layer 0: input_dim -> hidden
                       w2_ref, b2_ref,   # encoder layer 1: hidden -> encoding_dim
                       w3_ref, b3_ref,   # decoder layer 0: encoding_dim -> hidden
                       w4_ref, b4_ref,   # decoder layer 1: hidden -> input_dim
                       out_ref):
    mm = w1_ref.dtype                    # bf16 fast path or f32; acc always f32
    x = x_ref[...]

    h1 = jnp.dot(x.astype(mm), w1_ref[...],
                 preferred_element_type=jnp.float32) + b1_ref[...]
    h1 = jnp.maximum(h1, 0.0)            # ReLU (dropout = identity in eval)
    z = jnp.dot(h1.astype(mm), w2_ref[...],
                preferred_element_type=jnp.float32) + b2_ref[...]

    h2 = jnp.dot(z.astype(mm), w3_ref[...],
                 preferred_element_type=jnp.float32) + b3_ref[...]
    h2 = jnp.maximum(h2, 0.0)
    x_hat = jnp.dot(h2.astype(mm), w4_ref[...],
                    preferred_element_type=jnp.float32) + b4_ref[...]

    out_ref[...] = x_hat.astype(out_ref.dtype)   # final_nonlinearity = identity


def autoencoder_fused_kernel(x_ref,
                             w1_ref, b1_ref,     # input_dim -> hidden
                             w23_ref, b23_ref,   # hidden -> hidden (w2 @ w3 fused)
                             w4_ref, b4_ref,     # hidden -> input_dim
                             out_ref):
    mm = w1_ref.dtype
    x = x_ref[...]

    h1 = jnp.dot(x.astype(mm), w1_ref[...],
                 preferred_element_type=jnp.float32) + b1_ref[...]
    h1 = jnp.maximum(h1, 0.0)
    h2 = jnp.dot(h1.astype(mm), w23_ref[...],
                 preferred_element_type=jnp.float32) + b23_ref[...]
    h2 = jnp.maximum(h2, 0.0)
    x_hat = jnp.dot(h2.astype(mm), w4_ref[...],
                    preferred_element_type=jnp.float32) + b4_ref[...]

    out_ref[...] = x_hat.astype(out_ref.dtype)


# ------------------------- parameter preparation ---------------------------

def prepare_params(params, *, matmul_dtype=jnp.float32, fuse_latent=False):
    """One-time param prep (outside the per-call jit): bias -> (1, d) rows,
    optional bf16 cast of weights, optional encoder/decoder boundary fusion."""
    (w1, b1), (w2, b2), (w3, b3), (w4, b4) = params

    def wcast(w):
        return jnp.asarray(w).astype(matmul_dtype)

    def brow(b):
        return jnp.asarray(b).reshape(1, -1).astype(jnp.float32)

    if fuse_latent:
        w2f = jnp.asarray(w2).astype(jnp.float32)
        w3f = jnp.asarray(w3).astype(jnp.float32)
        w23 = w2f @ w3f
        b23 = brow(b2) @ w3f + brow(b3)
        return (wcast(w1), brow(b1),
                wcast(w23), b23.astype(jnp.float32),
                wcast(w4), brow(b4))
    return (wcast(w1), brow(b1), wcast(w2), brow(b2),
            wcast(w3), brow(b3), wcast(w4), brow(b4))


# ------------------------------ forward -------------------------------------

@functools.partial(jax.jit, static_argnames=("block_b", "fuse_latent"))
def autoencoder_forward(x, flat_params, *, block_b: int = 1024,
                        fuse_latent: bool = False):
    """Fused autoencoder forward. `flat_params` comes from prepare_params()."""
    B, D = x.shape
    D_out = flat_params[-2].shape[1]     # last weight's output dim (= input_dim)

    # Batch tile: as large as possible for the mem-bound roofline, but keep at
    # least 2 grid steps when B allows it so v7x's two TensorCores both work.
    TB = min(block_b, max(8, _round_up(pl.cdiv(B, 2), 8)))
    TB = min(TB, _round_up(B, 8))
    grid = (pl.cdiv(B, TB),)             # ragged last block handled by Pallas

    x_spec = pl.BlockSpec((TB, D), lambda i: (i, 0))
    out_spec = pl.BlockSpec((TB, D_out), lambda i: (i, 0))

    def resident(shape):                 # VMEM-resident across all grid steps
        return pl.BlockSpec(shape, lambda i: (0, 0))

    in_specs = [x_spec] + [resident(p.shape) for p in flat_params]

    weights = flat_params[0::2]
    flops = sum(2 * B * w.shape[0] * w.shape[1] for w in weights)
    param_bytes = sum(int(p.size) * p.dtype.itemsize for p in flat_params)
    bytes_accessed = (int(x.size) * x.dtype.itemsize
                      + B * D_out * jnp.dtype(x.dtype).itemsize
                      + param_bytes)

    kernel = autoencoder_fused_kernel if fuse_latent else autoencoder_kernel

    return pl.pallas_call(
        kernel,
        out_shape=jax.ShapeDtypeStruct((B, D_out), x.dtype),
        grid=grid,
        in_specs=in_specs,
        out_specs=out_spec,
        compiler_params=pltpu.CompilerParams(
            dimension_semantics=("parallel",)),
        cost_estimate=pl.CostEstimate(flops=flops, transcendentals=0,
                                      bytes_accessed=bytes_accessed),
    )(x, *flat_params)


# ------------------------------ reference -----------------------------------

def init_linear(key, d_in, d_out):
    """Deterministic init mimicking nn.Linear (uniform +-1/sqrt(d_in)).
    Weight returned pre-transposed: (d_in, d_out)."""
    kw, kb = jax.random.split(key)
    bound = 1.0 / (d_in ** 0.5)
    w = jax.random.uniform(kw, (d_in, d_out), jnp.float32, -bound, bound)
    b = jax.random.uniform(kb, (1, d_out), jnp.float32, -bound, bound)
    return w, b


def reference_forward(x, params):
    (w1, b1), (w2, b2), (w3, b3), (w4, b4) = params
    h1 = jnp.maximum(x @ w1 + b1, 0.0)
    z = h1 @ w2 + b2
    h2 = jnp.maximum(z @ w3 + b3, 0.0)
    return h2 @ w4 + b4


if __name__ == "__main__":
    # Autoencoder(input_dim=32, hidden_dims=[128], encoding_dim=64)
    # B=500 exercises the 2-step batch grid (TB=256) plus the ragged last tile.
    B, input_dim, hidden, encoding_dim = 500, 32, 128, 64

    key = jax.random.PRNGKey(0)
    kx, k1, k2, k3, k4 = jax.random.split(key, 5)

    x = jax.random.normal(kx, (B, input_dim), jnp.float32)

    params = (
        init_linear(k1, input_dim, hidden),        # encoder layer 0
        init_linear(k2, hidden, encoding_dim),     # encoder layer 1
        init_linear(k3, encoding_dim, hidden),     # decoder layer 0
        init_linear(k4, hidden, input_dim),        # decoder layer 1
    )

    ref = reference_forward(x, params)

    # --- f32 path (default): exact vs reference ---
    flat_f32 = prepare_params(params)              # hoisted out of the forward
    out = jax.block_until_ready(autoencoder_forward(x, flat_f32))
    assert out.shape == (B, input_dim)
    assert jnp.allclose(out, ref, atol=1e-5, rtol=1e-5), "f32 path mismatch"

    # --- f32 path with encoder/decoder boundary fusion (3 matmuls/tile) ---
    flat_fused = prepare_params(params, fuse_latent=True)
    out_fused = jax.block_until_ready(
        autoencoder_forward(x, flat_fused, fuse_latent=True))
    assert out_fused.shape == (B, input_dim)
    assert float(jnp.max(jnp.abs(out_fused - ref))) < 1e-3, "fused path mismatch"

    # --- bf16 matmul-input path (v6e/v7x MXU peak; f32 accumulation) ---
    flat_bf16 = prepare_params(params, matmul_dtype=jnp.bfloat16)
    out_bf16 = jax.block_until_ready(autoencoder_forward(x, flat_bf16))
    assert out_bf16.shape == (B, input_dim)
    assert float(jnp.max(jnp.abs(out_bf16 - ref))) < 2e-1, "bf16 path mismatch"

    print("KERNEL_OK")
</pallas_src>

<mosaic_0001>
module attributes {stable_mosaic.version = 11 : i64} {
  func.func @autoencoder_kernel(%arg0: i32, %arg1: memref<256x32xf32, #tpu.memory_space<vmem>>, %arg2: memref<32x128xf32, #tpu.memory_space<vmem>>, %arg3: memref<1x128xf32, #tpu.memory_space<vmem>>, %arg4: memref<128x64xf32, #tpu.memory_space<vmem>>, %arg5: memref<1x64xf32, #tpu.memory_space<vmem>>, %arg6: memref<64x128xf32, #tpu.memory_space<vmem>>, %arg7: memref<1x128xf32, #tpu.memory_space<vmem>>, %arg8: memref<128x32xf32, #tpu.memory_space<vmem>>, %arg9: memref<1x32xf32, #tpu.memory_space<vmem>>, %arg10: memref<256x32xf32, #tpu.memory_space<vmem>>) attributes {dimension_semantics = [#tpu.dimension_semantics<parallel>], iteration_bounds = array<i64: 2>, scalar_prefetch = 0 : i64, scratch_operands = 0 : i64, tpu.core_type = #tpu.core_type<tc>, window_params = [{transform_indices = @transform_0, window_bounds = array<i64: 256, 32>}, {pipeline_mode = #tpu.pipeline_mode<synchronous>, transform_indices = @transform_1, window_bounds = array<i64: 32, 128>}, {pipeline_mode = #tpu.pipeline_mode<synchronous>, transform_indices = @transform_2, window_bounds = array<i64: 1, 128>}, {pipeline_mode = #tpu.pipeline_mode<synchronous>, transform_indices = @transform_3, window_bounds = array<i64: 128, 64>}, {pipeline_mode = #tpu.pipeline_mode<synchronous>, transform_indices = @transform_4, window_bounds = array<i64: 1, 64>}, {pipeline_mode = #tpu.pipeline_mode<synchronous>, transform_indices = @transform_5, window_bounds = array<i64: 64, 128>}, {pipeline_mode = #tpu.pipeline_mode<synchronous>, transform_indices = @transform_6, window_bounds = array<i64: 1, 128>}, {pipeline_mode = #tpu.pipeline_mode<synchronous>, transform_indices = @transform_7, window_bounds = array<i64: 128, 32>}, {pipeline_mode = #tpu.pipeline_mode<synchronous>, transform_indices = @transform_8, window_bounds = array<i64: 1, 32>}, {transform_indices = @transform_9, window_bounds = array<i64: 256, 32>}]} {
    %c0 = arith.constant 0 : index
    %c0_0 = arith.constant 0 : index
    %0 = vector.load %arg1[%c0, %c0_0] : memref<256x32xf32, #tpu.memory_space<vmem>>, vector<256x32xf32>
    %c0_1 = arith.constant 0 : index
    %c0_2 = arith.constant 0 : index
    %1 = vector.load %arg2[%c0_1, %c0_2] : memref<32x128xf32, #tpu.memory_space<vmem>>, vector<32x128xf32>
    %cst = arith.constant dense<0.000000e+00> : vector<256x128xf32>
    %2 = tpu.matmul %0, %1, %cst {dimension_numbers = #tpu.dot_dimension_numbers<[1], [0], [0], [1], [0, 0, 1, 1], [], []>} : vector<256x32xf32>, vector<32x128xf32>, vector<256x128xf32> -> vector<256x128xf32>
    %c0_3 = arith.constant 0 : index
    %c0_4 = arith.constant 0 : index
    %3 = vector.load %arg3[%c0_3, %c0_4] : memref<1x128xf32, #tpu.memory_space<vmem>>, vector<1x128xf32>
    %4 = vector.broadcast %3 : vector<1x128xf32> to vector<256x128xf32>
    %5 = arith.addf %2, %4 : vector<256x128xf32>
    %cst_5 = arith.constant 0.000000e+00 : f32
    %6 = vector.broadcast %cst_5 : f32 to vector<256x128xf32>
    %7 = arith.maximumf %5, %6 : vector<256x128xf32>
    %c0_6 = arith.constant 0 : index
    %c0_7 = arith.constant 0 : index
    %8 = vector.load %arg4[%c0_6, %c0_7] : memref<128x64xf32, #tpu.memory_space<vmem>>, vector<128x64xf32>
    %cst_8 = arith.constant dense<0.000000e+00> : vector<256x64xf32>
    %9 = tpu.matmul %7, %8, %cst_8 {dimension_numbers = #tpu.dot_dimension_numbers<[1], [0], [0], [1], [0, 0, 1, 1], [], []>} : vector<256x128xf32>, vector<128x64xf32>, vector<256x64xf32> -> vector<256x64xf32>
    %c0_9 = arith.constant 0 : index
    %c0_10 = arith.constant 0 : index
    %10 = vector.load %arg5[%c0_9, %c0_10] : memref<1x64xf32, #tpu.memory_space<vmem>>, vector<1x64xf32>
    %11 = vector.broadcast %10 : vector<1x64xf32> to vector<256x64xf32>
    %12 = arith.addf %9, %11 : vector<256x64xf32>
    %c0_11 = arith.constant 0 : index
    %c0_12 = arith.constant 0 : index
    %13 = vector.load %arg6[%c0_11, %c0_12] : memref<64x128xf32, #tpu.memory_space<vmem>>, vector<64x128xf32>
    %cst_13 = arith.constant dense<0.000000e+00> : vector<256x128xf32>
    %14 = tpu.matmul %12, %13, %cst_13 {dimension_numbers = #tpu.dot_dimension_numbers<[1], [0], [0], [1], [0, 0, 1, 1], [], []>} : vector<256x64xf32>, vector<64x128xf32>, vector<256x128xf32> -> vector<256x128xf32>
    %c0_14 = arith.constant 0 : index
    %c0_15 = arith.constant 0 : index
    %15 = vector.load %arg7[%c0_14, %c0_15] : memref<1x128xf32, #tpu.memory_space<vmem>>, vector<1x128xf32>
    %16 = vector.broadcast %15 : vector<1x128xf32> to vector<256x128xf32>
    %17 = arith.addf %14, %16 : vector<256x128xf32>
    %cst_16 = arith.constant 0.000000e+00 : f32
    %18 = vector.broadcast %cst_16 : f32 to vector<256x128xf32>
    %19 = arith.maximumf %17, %18 : vector<256x128xf32>
    %c0_17 = arith.constant 0 : index
    %c0_18 = arith.constant 0 : index
    %20 = vector.load %arg8[%c0_17, %c0_18] : memref<128x32xf32, #tpu.memory_space<vmem>>, vector<128x32xf32>
    %cst_19 = arith.constant dense<0.000000e+00> : vector<256x32xf32>
    %21 = tpu.matmul %19, %20, %cst_19 {dimension_numbers = #tpu.dot_dimension_numbers<[1], [0], [0], [1], [0, 0, 1, 1], [], []>} : vector<256x128xf32>, vector<128x32xf32>, vector<256x32xf32> -> vector<256x32xf32>
    %c0_20 = arith.constant 0 : index
    %c0_21 = arith.constant 0 : index
    %22 = vector.load %arg9[%c0_20, %c0_21] : memref<1x32xf32, #tpu.memory_space<vmem>>, vector<1x32xf32>
    %23 = vector.broadcast %22 : vector<1x32xf32> to vector<256x32xf32>
    %24 = arith.addf %21, %23 : vector<256x32xf32>
    %c0_22 = arith.constant 0 : index
    %c0_23 = arith.constant 0 : index
    %25 = vector.load %arg10[%c0_22, %c0_23] : memref<256x32xf32, #tpu.memory_space<vmem>>, vector<256x32xf32>
    tpu.vector_store %arg10[%c0_22, %c0_23], %24 {strides = array<i32>} : memref<256x32xf32, #tpu.memory_space<vmem>>, vector<256x32xf32>,
    return
  }
  func.func @transform_0(%arg0: i32) -> (i32, i32) {
    %c0_i32 = arith.constant 0 : i32
    %c0_i32_0 = arith.constant 0 : i32
    return %arg0, %c0_i32 : i32, i32
  }
  func.func @transform_1(%arg0: i32) -> (i32, i32) {
    %c0_i32 = arith.constant 0 : i32
    %c0_i32_0 = arith.constant 0 : i32
    %c0_i32_1 = arith.constant 0 : i32
    return %c0_i32, %c0_i32_0 : i32, i32
  }
  func.func @transform_2(%arg0: i32) -> (i32, i32) {
    %c0_i32 = arith.constant 0 : i32
    %c0_i32_0 = arith.constant 0 : i32
    %c0_i32_1 = arith.constant 0 : i32
    return %c0_i32, %c0_i32_0 : i32, i32
  }
  func.func @transform_3(%arg0: i32) -> (i32, i32) {
    %c0_i32 = arith.constant 0 : i32
    %c0_i32_0 = arith.constant 0 : i32
    %c0_i32_1 = arith.constant 0 : i32
    return %c0_i32, %c0_i32_0 : i32, i32
  }
  func.func @transform_4(%arg0: i32) -> (i32, i32) {
    %c0_i32 = arith.constant 0 : i32
    %c0_i32_0 = arith.constant 0 : i32
    %c0_i32_1 = arith.constant 0 : i32
    return %c0_i32, %c0_i32_0 : i32, i32
  }
  func.func @transform_5(%arg0: i32) -> (i32, i32) {
    %c0_i32 = arith.constant 0 : i32
    %c0_i32_0 = arith.constant 0 : i32
    %c0_i32_1 = arith.constant 0 : i32
    return %c0_i32, %c0_i32_0 : i32, i32
  }
  func.func @transform_6(%arg0: i32) -> (i32, i32) {
    %c0_i32 = arith.constant 0 : i32
    %c0_i32_0 = arith.constant 0 : i32
    %c0_i32_1 = arith.constant 0 : i32
    return %c0_i32, %c0_i32_0 : i32, i32
  }
  func.func @transform_7(%arg0: i32) -> (i32, i32) {
    %c0_i32 = arith.constant 0 : i32
    %c0_i32_0 = arith.constant 0 : i32
    %c0_i32_1 = arith.constant 0 : i32
    return %c0_i32, %c0_i32_0 : i32, i32
  }
  func.func @transform_8(%arg0: i32) -> (i32, i32) {
    %c0_i32 = arith.constant 0 : i32
    %c0_i32_0 = arith.constant 0 : i32
    %c0_i32_1 = arith.constant 0 : i32
    return %c0_i32, %c0_i32_0 : i32, i32
  }
  func.func @transform_9(%arg0: i32) -> (i32, i32) {
    %c0_i32 = arith.constant 0 : i32
    %c0_i32_0 = arith.constant 0 : i32
    return %arg0, %c0_i32 : i32, i32
  }
}

</mosaic_0001>

<bundles_post_ra>
// kernel: autoencoder_forward.1
= control target key start
LH: loop header
LB: loop body
LE: loop exit
PB: predicated region body
PF: predicated region fallthrough
CT: control target
= control target key end

     0   :  { %s2864_s30 = smov 0   ;;  %s2866_s10 = smov 0   ;;  %s3491_s0 = inlined_call_operand.vmem [shape: f32[500,32], index: 0, kind: input, shape index: {}]   ;;  %s3492_s1 = inlined_call_operand.vmem [shape: f32[32,128], index: 1, kind: input, shape index: {}]   ;;  %s3493_s2 = inlined_call_operand.vmem [shape: f32[1,128], index: 2, kind: input, shape index: {}]   ;;  %s3494_s3 = inlined_call_operand.vmem [shape: f32[128,64], index: 3, kind: input, shape index: {}]   ;;  %s3495_s4 = inlined_call_operand.vmem [shape: f32[1,64], index: 4, kind: input, shape index: {}]   ;;  %s3496_s5 = inlined_call_operand.vmem [shape: f32[64,128], index: 5, kind: input, shape index: {}]   ;;  %s3497_s6 = inlined_call_operand.vmem [shape: f32[1,128], index: 6, kind: input, shape index: {}]   ;;  %s3498_s7 = inlined_call_operand.vmem [shape: f32[128,32], index: 7, kind: input, shape index: {}]   ;;  %s3499_s8 = inlined_call_operand.vmem [shape: f32[1,32], index: 8, kind: input, shape index: {}]   ;;  %s3500_s9 = inlined_call_operand.vmem [shape: f32[500,32], index: 9, kind: output, shape index: {}]  }
   0x1   :  { %s2868_s11 = smov 0  }
   0x2 LB: > { %s2877_s12 = sadd.s32 4294967295, %s2780_s11   ;;  %s2879_s13 = sadd.s32 1, %s2780_s11   ;;  %s2780_s11 = sphi %s2868_s11, %s3509_s11   ;;  %s2776_s10 = sphi %s2866_s10, %s3508_s10   ;;  %s2772_s30 = sphi %s2864_s30, %s3507_s30  }
   0x3   : > { %s217_s14 = ssub.s32 %s2780_s11, %s2879_s13  ;;  %s220_s15 = sadd.s32 1, %s2776_s10 }
   0x4   : > { %p218_p0 = scmp.eq.s32.totalorder %s217_s14, 0  ;;  %p230_p1 = scmp.ne.s32.totalorder %s2776_s10, %s2772_s30 }
   0x5   : > { %p231_p2 = scmp.eq.s32.totalorder %s2877_s12, 1  ;;  %p1990_p3 = scmp.ge.s32.totalorder %s2780_s11, 1 }
   0x6   : > { %s2887_s16 = scalar_select %p218_p0, %s2776_s10, %s220_s15  }
   0x7   : > { %p2889_p4 = por %p231_p2, %p230_p1  ;;  %p296_p5 = scmp.lt.s32.totalorder %s2780_s11, 3 }
   0x9   : > { %p297_p6 = pnand %p1990_p3, %p296_p5 }
   0xa   : > { %v386_v0 = vld [vmem:[%s3492_s1] sm:$0xff] (!%p297_p6)  ;;  %v387_v1 = vld [vmem:[%s3492_s1 + $0x8] sm:$0xff] (!%p297_p6)  ;;  %v388_v2 = vld [vmem:[%s3492_s1 + $0x10] sm:$0xff] (!%p297_p6)  ;;  %s2903_s24 = sshll.u32 (!%p297_p6), %s2877_s12, 5  ;;  %vm397_vm0 = vcmask (!%p297_p6), 261120   ;;  %vm1014_vm1 = vcmask (!%p297_p6), 523264  }
   0xb   : > { %300 = sbr.rel (%p297_p6) target bundleno = 1008 (0x3f0), region = 56  ;;  %v2534_v3 = vpack.c.bf16 (!%p297_p6), %v387_v1, %v386_v0  ;;  %v389_v4 = vld [vmem:[%s3492_s1 + $0x18] sm:$0xff] (!%p297_p6)  ;;  %p340_p7 = scmp.lt.s32.totalorder (!%p297_p6), %s2903_s24, 62  ;;  %v751_v5 = vld [vmem:[%s3494_s3] sm:$0xff] (!%p297_p6)  ;;  %v752_v6 = vld [vmem:[%s3494_s3 + $0x8] sm:$0xff] (!%p297_p6) }
   0xc   : > { %v2538_v7 = vpack.c.bf16 (!%p297_p6), %v389_v4, %v388_v2  ;;  %v2542_v8 = vpack.c.bf16 (!%p297_p6), %v752_v6, %v751_v5  ;;  %v753_v9 = vld [vmem:[%s3494_s3 + $0x10] sm:$0xff] (!%p297_p6)  ;;  %v754_v10 = vld [vmem:[%s3494_s3 + $0x18] sm:$0xff] (!%p297_p6)  ;;  %v755_v12 = vld [vmem:[%s3494_s3 + $0x20] sm:$0xff] (!%p297_p6) }
   0xd   : > { %2535 = vmatprep.subr.bf16.mxu0 (!%p297_p6), %v2534_v3  ;;  %v2546_v11 = vpack.c.bf16 (!%p297_p6), %v754_v10, %v753_v9  ;;  %v756_v13 = vld [vmem:[%s3494_s3 + $0x28] sm:$0xff] (!%p297_p6)  ;;  %v757_v16 = vld [vmem:[%s3494_s3 + $0x30] sm:$0xff] (!%p297_p6)  ;;  %v758_v17 = vld [vmem:[%s3494_s3 + $0x38] sm:$0xff] (!%p297_p6) }
   0xe   : > { %2537 = vmatpush3.bf16.msra.mxu0 (!%p297_p6), %v2534_v3  ;;  %2543 = vmatprep.subr.bf16.mxu1 (!%p297_p6), %v2542_v8  ;;  %v2550_v14 = vpack.c.bf16 (!%p297_p6), %v756_v13, %v755_v12  ;;  %v2554_v20 = vpack.c.bf16 (!%p297_p6), %v758_v17, %v757_v16  ;;  %v759_v21 = vld [vmem:[%s3494_s3 + $0x40] sm:$0xff] (!%p297_p6)  ;;  %v760_v22 = vld [vmem:[%s3494_s3 + $0x48] sm:$0xff] (!%p297_p6)  ;;  %v761_v26 = vld [vmem:[%s3494_s3 + $0x50] sm:$0xff] (!%p297_p6) }
   0xf   : > { %2539 = vmatprep.subr.bf16.mxu0 (!%p297_p6), %v2538_v7  ;;  %2545 = vmatpush3.bf16.msra.mxu1 (!%p297_p6), %v2542_v8  ;;  %v2558_v25 = vpack.c.bf16 (!%p297_p6), %v760_v22, %v759_v21  ;;  %v762_v27 = vld [vmem:[%s3494_s3 + $0x58] sm:$0xff] (!%p297_p6)  ;;  %v763_v31 = vld [vmem:[%s3494_s3 + $0x60] sm:$0xff] (!%p297_p6)  ;;  %v764_v32 = vld [vmem:[%s3494_s3 + $0x68] sm:$0xff] (!%p297_p6) }
  0x10   : > { %2547 = vmatprep.subr.bf16.mxu1 (!%p297_p6), %v2546_v11  ;;  %v2562_v30 = vpack.c.bf16 (!%p297_p6), %v762_v27, %v761_v26  ;;  %v2566_v35 = vpack.c.bf16 (!%p297_p6), %v764_v32, %v763_v31  ;;  %v765_v59 = vld [vmem:[%s3494_s3 + $0x70] sm:$0xff] (!%p297_p6)  ;;  %v766_v60 = vld [vmem:[%s3494_s3 + $0x78] sm:$0xff] (!%p297_p6)  ;;  %v999_v62 = vld [vmem:[%s3496_s5] sm:$0xff] (!%p297_p6) }
  0x11   : > { %v2570_v61 = vpack.c.bf16 (!%p297_p6), %v766_v60, %v765_v59  ;;  %v1000_v63 = vld [vmem:[%s3496_s5 + $0x8] sm:$0xff] (!%p297_p6)  ;;  %v1001_v0 = vld [vmem:[%s3496_s5 + $0x10] sm:$0xff] (!%p297_p6)  ;;  %v1002_v2 = vld [vmem:[%s3496_s5 + $0x18] sm:$0xff] (!%p297_p6) }
  0x12   : > { %s341_s20 = scalar_select %p340_p7, %s2903_s24, 62  ;;  %2541 = vmatpush3.bf16.msra.mxu0 %v2538_v7  ;;  %v2574_v1 = vpack.c.bf16 %v1000_v63, %v999_v62  ;;  %v2578_v3 = vpack.c.bf16 %v1002_v2, %v1001_v0  ;;  %v1003_v4 = vld [vmem:[%s3496_s5 + $0x20] sm:$0xff]  ;;  %v1004_v5 = vld [vmem:[%s3496_s5 + $0x28] sm:$0xff]  ;;  %v1005_v7 = vld [vmem:[%s3496_s5 + $0x30] sm:$0xff] }
  0x13   : > { %2549 = vmatpush3.bf16.msra.mxu1 %v2546_v11  ;;  %v2582_v6 = vpack.c.bf16 %v1004_v5, %v1003_v4  ;;  %v1006_v8 = vld [vmem:[%s3496_s5 + $0x38] sm:$0xff]  ;;  %v3054_v10 = vld [vmem:[%s3493_s2] ss:$0 sm:$0xff] }
  0x14   : > { %s1993_s26 = sshll.u32 %s341_s20, 3  ;;  %2551 = vmatprep.subr.bf16.mxu1 %v2550_v14  ;;  %2575 = vmatprep.subr.bf16.mxu0 %v2574_v1  ;;  %v2586_v9 = vpack.c.bf16 %v1006_v8, %v1005_v7  ;;  %s332_s20 = sand.u32 1, %s2772_s30  }
  0x15   : > { %s2931_s29 = scalar_lea.vmem %s3491_s0, %s1993_s26  ;;  %s1991_s21 = sshll.u32 %s332_s20, 8 }
  0x16   : > { %v354_v15 = vld [vmem:[%s2931_s29] sm:$0xff]  ;;  %v355_v18 = vld [vmem:[%s2931_s29 + $0x8] sm:$0xff]  ;;  %v356_v19 = vld [vmem:[%s2931_s29 + $0x10] sm:$0xff]  ;;  %s3256_s25 = scalar_lea.vmem [#allocation2], %s1991_s21   ;;  %s1656_s30 = ssub.s32 (%p2889_p4), 63, %s2903_s24 }
  0x17   : > { %2262 = vmatprep.mubr.msk.f32.mxu0 %vm397_vm0, %v354_v15  ;;  %v357_v23 = vld [vmem:[%s2931_s29 + $0x18] sm:$0xff]  ;;  %v358_v24 = vld [vmem:[%s2931_s29 + $0x20] sm:$0xff]  ;;  %2553 = vmatpush3.bf16.msra.mxu1 %v2550_v14  ;;  %v359_v28 = vld [vmem:[%s2931_s29 + $0x28] sm:$0xff]  ;;  %s2079_s26 = sshll.u32 (%p2889_p4), %s2877_s12, 8  ;;  %p1657_p8 = scmp.lt.s32.totalorder (%p2889_p4), %s1656_s30, 32 }
  0x18   : > { %2263 = vmatmul.mubr.msk.f32.vlgmr.msra.gmra.mrb[0].mxu0 %vm397_vm0, %v355_v18  ;;  %2555 = vmatprep.subr.bf16.mxu1 %v2554_v20  ;;  %v360_v29 = vld [vmem:[%s2931_s29 + $0x30] sm:$0xff]  ;;  %v361_v33 = vld [vmem:[%s2931_s29 + $0x38] sm:$0xff]  ;;  %v362_v34 = vld [vmem:[%s2931_s29 + $0x40] sm:$0xff]  ;;  %s3359_s28 = scalar_lea.vmem (%p2889_p4), %s3500_s9, %s2079_s26  }
  0x19   : > { %2265 = vmatprep.mubr.msk.f32.mxu0 %vm397_vm0, %v356_v19  ;;  %v363_v36 = vld [vmem:[%s2931_s29 + $0x48] sm:$0xff]  ;;  %v364_v37 = vld [vmem:[%s2931_s29 + $0x50] sm:$0xff]  ;;  %v365_v38 = vld [vmem:[%s2931_s29 + $0x58] sm:$0xff]  ;;  %2577 = vmatpush3.bf16.msra.mxu0 %v2574_v1 }
  0x1a   : > { %v366_v39 = vld [vmem:[%s2931_s29 + $0x60] sm:$0xff]  ;;  %v367_v40 = vld [vmem:[%s2931_s29 + $0x68] sm:$0xff]  ;;  %v368_v41 = vld [vmem:[%s2931_s29 + $0x70] sm:$0xff]  ;;  %2579 = vmatprep.subr.bf16.mxu0 %v2578_v3 }
  0x1b   : > { %2557 = vmatpush3.bf16.msra.mxu1 %v2554_v20  ;;  %v369_v42 = vld [vmem:[%s2931_s29 + $0x78] sm:$0xff]  ;;  %v370_v43 = vld [vmem:[%s2931_s29 + $0x80] sm:$0xff]  ;;  %v371_v44 = vld [vmem:[%s2931_s29 + $0x88] sm:$0xff] }
  0x1c   : > { %2266 = vmatmul.mubr.msk.f32.gmra.mrb[2].mxu0 %vm397_vm0, %v357_v23  ;;  %2559 = vmatprep.subr.bf16.mxu1 %v2558_v25  ;;  %v372_v45 = vld [vmem:[%s2931_s29 + $0x90] sm:$0xff]  ;;  %v373_v46 = vld [vmem:[%s2931_s29 + $0x98] sm:$0xff]  ;;  %v374_v47 = vld [vmem:[%s2931_s29 + $0xa0] sm:$0xff] }
  0x1d   : > { %2268 = vmatprep.mubr.msk.f32.mxu0 %vm397_vm0, %v358_v24  ;;  %v375_v48 = vld [vmem:[%s2931_s29 + $0xa8] sm:$0xff]  ;;  %v376_v49 = vld [vmem:[%s2931_s29 + $0xb0] sm:$0xff]  ;;  %v377_v50 = vld [vmem:[%s2931_s29 + $0xb8] sm:$0xff]  ;;  %2581 = vmatpush3.bf16.msra.mxu0 %v2578_v3 }
  0x1e   : > { %v378_v51 = vld [vmem:[%s2931_s29 + $0xc0] sm:$0xff]  ;;  %v379_v52 = vld [vmem:[%s2931_s29 + $0xc8] sm:$0xff]  ;;  %v380_v53 = vld [vmem:[%s2931_s29 + $0xd0] sm:$0xff]  ;;  %2583 = vmatprep.subr.bf16.mxu0 %v2582_v6 }
  0x1f   : > { %2561 = vmatpush3.bf16.msra.mxu1 %v2558_v25  ;;  %v381_v54 = vld [vmem:[%s2931_s29 + $0xd8] sm:$0xff]  ;;  %v382_v55 = vld [vmem:[%s2931_s29 + $0xe0] sm:$0xff]  ;;  %v383_v56 = vld [vmem:[%s2931_s29 + $0xe8] sm:$0xff] }
  0x20   : > { %2269 = vmatmul.mubr.msk.f32.gmra.mrb[4].mxu0 %vm397_vm0, %v359_v28  ;;  %2563 = vmatprep.subr.bf16.mxu1 %v2562_v30  ;;  %v384_v57 = vld [vmem:[%s2931_s29 + $0xf0] sm:$0xff]  ;;  %v385_v58 = vld [vmem:[%s2931_s29 + $0xf8] sm:$0xff] }
  0x21   : > { %2271 = vmatprep.mubr.msk.f32.mxu0 %vm397_vm0, %v360_v29  ;;  %2585 = vmatpush3.bf16.msra.mxu0 %v2582_v6 }
  0x22   : > { %2587 = vmatprep.subr.bf16.mxu0 %v2586_v9 }
  0x23   : > { %2565 = vmatpush3.bf16.msra.mxu1 %v2562_v30 }
  0x24   : > { %2272 = vmatmul.mubr.msk.f32.gmra.mrb[6].mxu0 %vm397_vm0, %v361_v33  ;;  %2567 = vmatprep.subr.bf16.mxu1 %v2566_v35 }
  0x25   : > { %2274 = vmatprep.mubr.msk.f32.mxu0 %vm397_vm0, %v362_v34  ;;  %2589 = vmatpush3.bf16.msra.mxu0 %v2586_v9 }
  0x27   : > { %2569 = vmatpush3.bf16.msra.mxu1 %v2566_v35 }
  0x28   : > { %2275 = vmatmul.mubr.msk.f32.gmra.mrb[8].mxu0 %vm397_vm0, %v363_v36  ;;  %2571 = vmatprep.subr.bf16.mxu1 %v2570_v61 }
  0x29   : > { %2277 = vmatprep.mubr.msk.f32.mxu0 %vm397_vm0, %v364_v37 }
  0x2b   : > { %2573 = vmatpush3.bf16.msra.mxu1 %v2570_v61 }
  0x2c   : > { %2278 = vmatmul.mubr.msk.f32.gmra.mrb[10].mxu0 %vm397_vm0, %v365_v38 }
  0x2d   : > { %2280 = vmatprep.mubr.msk.f32.mxu0 %vm397_vm0, %v366_v39 }
  0x30   : > { %2281 = vmatmul.mubr.msk.f32.gmra.mrb[12].mxu0 %vm397_vm0, %v367_v40 }
  0x31   : > { %2283 = vmatprep.mubr.msk.f32.mxu0 %vm397_vm0, %v368_v41 }
  0x34   : > { %2284 = vmatmul.mubr.msk.f32.gmra.mrb[14].mxu0 %vm397_vm0, %v369_v42 }
  0x35   : > { %2286 = vmatprep.mubr.msk.f32.mxu0 %vm397_vm0, %v370_v43 }
  0x38   : > { %2287 = vmatmul.mubr.msk.f32.gmra.mrb[16].mxu0 %vm397_vm0, %v371_v44 }
  0x39   : > { %2289 = vmatprep.mubr.msk.f32.mxu0 %vm397_vm0, %v372_v45 }
  0x3c   : > { %2290 = vmatmul.mubr.msk.f32.gmra.mrb[18].mxu0 %vm397_vm0, %v373_v46 }
  0x3d   : > { %2292 = vmatprep.mubr.msk.f32.mxu0 %vm397_vm0, %v374_v47 }
  0x40   : > { %2293 = vmatmul.mubr.msk.f32.gmra.mrb[20].mxu0 %vm397_vm0, %v375_v48 }
  0x41   : > { %2295 = vmatprep.mubr.msk.f32.mxu0 %vm397_vm0, %v376_v49 }
  0x44   : > { %2296 = vmatmul.mubr.msk.f32.gmra.mrb[22].mxu0 %vm397_vm0, %v377_v50 }
  0x45   : > { %2298 = vmatprep.mubr.msk.f32.mxu0 %vm397_vm0, %v378_v51 }
  0x48   : > { %2299 = vmatmul.mubr.msk.f32.gmra.mrb[24].mxu0 %vm397_vm0, %v379_v52 }
  0x49   : > { %2301 = vmatprep.mubr.msk.f32.mxu0 %vm397_vm0, %v380_v53 }
  0x4c   : > { %2302 = vmatmul.mubr.msk.f32.gmra.mrb[26].mxu0 %vm397_vm0, %v381_v54 }
  0x4d   : > { %2304 = vmatprep.mubr.msk.f32.mxu0 %vm397_vm0, %v382_v55 }
  0x50   : > { %2305 = vmatmul.mubr.msk.f32.gmra.mrb[28].mxu0 %vm397_vm0, %v383_v56 }
  0x51   : > { %2307 = vmatprep.mubr.msk.f32.mxu0 %vm397_vm0, %v384_v57 }
  0x54   : > { %2308 = vmatmul.mubr.msk.f32.gmra.mrb[30].mxu0 %vm397_vm0, %v385_v58 }
  0xeb   : > { %v2264_v11 = vpop.f32.mrb[0].mxu0 }
  0xec   : > { %v566_v12 = vadd.f32 %v2264_v11, %v3054_v10  ;;  %v560_v13 = vpop.f32.mrb[1].mxu0 }
  0xed   : > { %v561_v14 = vadd.f32 %v3054_v10, %v560_v13 }
  0xee   : > { %v720_v17 = vmax.f32 %v566_v12, 0.0 }
  0xef   : > { %v2267_v15 = vpop.f32.mrb[2].mxu0  ;;  %v719_v16 = vmax.f32 %v561_v14, 0.0 }
  0xf0   : > { %v576_v18 = vadd.f32 %v2267_v15, %v3054_v10  ;;  %v570_v19 = vpop.f32.mrb[3].mxu0 }
  0xf1   : > { %v571_v20 = vadd.f32 %v3054_v10, %v570_v19  ;;  %2342 = vmatprep.mubr.f32.mxu1 %v719_v16 }
  0xf2   : > { %2343 = vmatmul.mubr.f32.vlgmr.msra.gmra.mrb[0].mxu1 %v720_v17  ;;  %v722_v23 = vmax.f32 %v576_v18, 0.0 }
  0xf3   : > { %v721_v21 = vmax.f32 %v571_v20, 0.0  ;;  %v2270_v22 = vpop.f32.mrb[4].mxu0 }
  0xf4   : > { %v586_v24 = vadd.f32 %v2270_v22, %v3054_v10  ;;  %v580_v25 = vpop.f32.mrb[5].mxu0 }
  0xf5   : > { %v581_v26 = vadd.f32 %v3054_v10, %v580_v25  ;;  %2345 = vmatprep.mubr.f32.mxu1 %v721_v21 }
  0xf6   : > { %2346 = vmatmul.mubr.f32.gmra.mrb[2].mxu1 %v722_v23  ;;  %v724_v29 = vmax.f32 %v586_v24, 0.0 }
  0xf7   : > { %v723_v27 = vmax.f32 %v581_v26, 0.0  ;;  %v2273_v28 = vpop.f32.mrb[6].mxu0 }
  0xf8   : > { %v596_v30 = vadd.f32 %v2273_v28, %v3054_v10  ;;  %v590_v31 = vpop.f32.mrb[7].mxu0 }
  0xf9   : > { %v591_v32 = vadd.f32 %v3054_v10, %v590_v31  ;;  %2348 = vmatprep.mubr.f32.mxu1 %v723_v27 }
  0xfa   : > { %2349 = vmatmul.mubr.f32.gmra.mrb[4].mxu1 %v724_v29  ;;  %v726_v35 = vmax.f32 %v596_v30, 0.0 }
  0xfb   : > { %v725_v33 = vmax.f32 %v591_v32, 0.0  ;;  %v2276_v34 = vpop.f32.mrb[8].mxu0 }
  0xfc   : > { %v606_v36 = vadd.f32 %v2276_v34, %v3054_v10  ;;  %v600_v37 = vpop.f32.mrb[9].mxu0 }
  0xfd   : > { %v601_v38 = vadd.f32 %v3054_v10, %v600_v37  ;;  %2351 = vmatprep.mubr.f32.mxu1 %v725_v33 }
  0xfe   : > { %2352 = vmatmul.mubr.f32.gmra.mrb[6].mxu1 %v726_v35  ;;  %v728_v41 = vmax.f32 %v606_v36, 0.0 }
  0xff   : > { %v727_v39 = vmax.f32 %v601_v38, 0.0  ;;  %v2279_v40 = vpop.f32.mrb[10].mxu0 }
 0x100   : > { %v616_v42 = vadd.f32 %v2279_v40, %v3054_v10  ;;  %v610_v43 = vpop.f32.mrb[11].mxu0 }
 0x101   : > { %v611_v44 = vadd.f32 %v3054_v10, %v610_v43  ;;  %2354 = vmatprep.mubr.f32.mxu1 %v727_v39 }
 0x102   : > { %2355 = vmatmul.mubr.f32.gmra.mrb[8].mxu1 %v728_v41  ;;  %v730_v47 = vmax.f32 %v616_v42, 0.0 }
 0x103   : > { %v729_v45 = vmax.f32 %v611_v44, 0.0  ;;  %v2282_v46 = vpop.f32.mrb[12].mxu0  ;;  %v1368_v44 = vld [vmem:[%s3498_s7] sm:$0xff] }
 0x104   : > { %v626_v48 = vadd.f32 %v2282_v46, %v3054_v10  ;;  %v620_v49 = vpop.f32.mrb[13].mxu0  ;;  %v1370_v46 = vld [vmem:[%s3498_s7 + $0x10] sm:$0xff] }
 0x105   : > { %v621_v50 = vadd.f32 %v3054_v10, %v620_v49  ;;  %2357 = vmatprep.mubr.f32.mxu1 %v729_v45  ;;  %v1369_v45 = vld [vmem:[%s3498_s7 + $0x8] sm:$0xff]  ;;  %v1372_v49 = vld [vmem:[%s3498_s7 + $0x20] sm:$0xff] }
 0x106   : > { %2358 = vmatmul.mubr.f32.gmra.mrb[10].mxu1 %v730_v47  ;;  %v732_v53 = vmax.f32 %v626_v48, 0.0  ;;  %v2590_v47 = vpack.c.bf16 %v1369_v45, %v1368_v44 }
 0x107   : > { %v731_v51 = vmax.f32 %v621_v50, 0.0  ;;  %v2285_v52 = vpop.f32.mrb[14].mxu0  ;;  %v1373_v50 = vld [vmem:[%s3498_s7 + $0x28] sm:$0xff] }
 0x108   : > { %v636_v54 = vadd.f32 %v2285_v52, %v3054_v10  ;;  %v630_v55 = vpop.f32.mrb[15].mxu0  ;;  %2622 = vmatprep.subr.bf16.mxu1 %v2590_v47  ;;  %2591 = vmatprep.subr.bf16.mxu0 %v2590_v47  ;;  %v1374_v52 = vld [vmem:[%s3498_s7 + $0x30] sm:$0xff] }
 0x109   : > { %v631_v56 = vadd.f32 %v3054_v10, %v630_v55  ;;  %2360 = vmatprep.mubr.f32.mxu1 %v731_v51  ;;  %2630 = vmatpush3.bf16.msra.mxu1 %v2590_v47  ;;  %v2598_v51 = vpack.c.bf16 %v1373_v50, %v1372_v49  ;;  %v1376_v55 = vld [vmem:[%s3498_s7 + $0x40] sm:$0xff] }
 0x10a   : > { %2361 = vmatmul.mubr.f32.gmra.mrb[12].mxu1 %v732_v53  ;;  %v734_v59 = vmax.f32 %v636_v54, 0.0  ;;  %v1375_v53 = vld [vmem:[%s3498_s7 + $0x38] sm:$0xff] }
 0x10b   : > { %v733_v57 = vmax.f32 %v631_v56, 0.0  ;;  %v2288_v58 = vpop.f32.mrb[16].mxu0  ;;  %v2602_v54 = vpack.c.bf16 %v1375_v53, %v1374_v52  ;;  %v1377_v56 = vld [vmem:[%s3498_s7 + $0x48] sm:$0xff] }
 0x10c   : > { %v646_v60 = vadd.f32 %v2288_v58, %v3054_v10  ;;  %v640_v61 = vpop.f32.mrb[17].mxu0  ;;  %v1378_v58 = vld [vmem:[%s3498_s7 + $0x50] sm:$0xff] }
 0x10d   : > { %v641_v62 = vadd.f32 %v3054_v10, %v640_v61  ;;  %2363 = vmatprep.mubr.f32.mxu1 %v733_v57  ;;  %v2606_v57 = vpack.c.bf16 %v1377_v56, %v1376_v55  ;;  %v1380_v61 = vld [vmem:[%s3498_s7 + $0x60] sm:$0xff] }
 0x10e   : > { %2364 = vmatmul.mubr.f32.gmra.mrb[14].mxu1 %v734_v59  ;;  %v736_v1 = vmax.f32 %v646_v60, 0.0  ;;  %v1379_v59 = vld [vmem:[%s3498_s7 + $0x58] sm:$0xff] }
 0x10f   : > { %v735_v63 = vmax.f32 %v641_v62, 0.0  ;;  %v2291_v0 = vpop.f32.mrb[18].mxu0  ;;  %v2610_v60 = vpack.c.bf16 %v1379_v59, %v1378_v58  ;;  %v1381_v62 = vld [vmem:[%s3498_s7 + $0x68] sm:$0xff] }
 0x110   : > { %v656_v2 = vadd.f32 %v2291_v0, %v3054_v10  ;;  %v650_v3 = vpop.f32.mrb[19].mxu0  ;;  %v3137_v0 = vld [vmem:[%s3495_s4] ss:$0 sm:$0xff] }
 0x111   : > { %v651_v4 = vadd.f32 %v3054_v10, %v650_v3  ;;  %2366 = vmatprep.mubr.f32.mxu1 %v735_v63  ;;  %v3130_v63 = vpack.c.bf16 %v1381_v62, %v1380_v61 }
 0x112   : > { %2367 = vmatmul.mubr.f32.gmra.mrb[16].mxu1 %v736_v1  ;;  %v738_v7 = vmax.f32 %v656_v2, 0.0 }
 0x113   : > { %v737_v5 = vmax.f32 %v651_v4, 0.0  ;;  %v2294_v6 = vpop.f32.mrb[20].mxu0 }
 0x114   : > { %v666_v8 = vadd.f32 %v2294_v6, %v3054_v10  ;;  %v660_v9 = vpop.f32.mrb[21].mxu0 }
 0x115   : > { %v661_v11 = vadd.f32 %v3054_v10, %v660_v9  ;;  %2369 = vmatprep.mubr.f32.mxu1 %v737_v5 }
 0x116   : > { %2370 = vmatmul.mubr.f32.gmra.mrb[18].mxu1 %v738_v7  ;;  %v740_v14 = vmax.f32 %v666_v8, 0.0 }
 0x117   : > { %v739_v12 = vmax.f32 %v661_v11, 0.0  ;;  %v2297_v13 = vpop.f32.mrb[22].mxu0 }
 0x118   : > { %v676_v15 = vadd.f32 %v2297_v13, %v3054_v10  ;;  %v670_v16 = vpop.f32.mrb[23].mxu0 }
 0x119   : > { %v671_v17 = vadd.f32 %v3054_v10, %v670_v16  ;;  %2372 = vmatprep.mubr.f32.mxu1 %v739_v12 }
 0x11a   : > { %2373 = vmatmul.mubr.f32.gmra.mrb[20].mxu1 %v740_v14  ;;  %v742_v20 = vmax.f32 %v676_v15, 0.0 }
 0x11b   : > { %v741_v18 = vmax.f32 %v671_v17, 0.0  ;;  %v2300_v19 = vpop.f32.mrb[24].mxu0 }
 0x11c   : > { %v686_v21 = vadd.f32 %v2300_v19, %v3054_v10  ;;  %v680_v22 = vpop.f32.mrb[25].mxu0 }
 0x11d   : > { %v681_v23 = vadd.f32 %v3054_v10, %v680_v22  ;;  %2375 = vmatprep.mubr.f32.mxu1 %v741_v18 }
 0x11e   : > { %2376 = vmatmul.mubr.f32.gmra.mrb[22].mxu1 %v742_v20  ;;  %v744_v26 = vmax.f32 %v686_v21, 0.0 }
 0x11f   : > { %v743_v24 = vmax.f32 %v681_v23, 0.0  ;;  %v2303_v25 = vpop.f32.mrb[26].mxu0 }
 0x120   : > { %v696_v27 = vadd.f32 %v2303_v25, %v3054_v10  ;;  %v690_v28 = vpop.f32.mrb[27].mxu0 }
 0x121   : > { %v691_v29 = vadd.f32 %v3054_v10, %v690_v28  ;;  %2378 = vmatprep.mubr.f32.mxu1 %v743_v24 }
 0x122   : > { %2379 = vmatmul.mubr.f32.gmra.mrb[24].mxu1 %v744_v26  ;;  %v746_v32 = vmax.f32 %v696_v27, 0.0 }
 0x123   : > { %v745_v30 = vmax.f32 %v691_v29, 0.0  ;;  %v2306_v31 = vpop.f32.mrb[28].mxu0 }
 0x124   : > { %v706_v33 = vadd.f32 %v2306_v31, %v3054_v10  ;;  %v700_v34 = vpop.f32.mrb[29].mxu0 }
 0x125   : > { %v701_v35 = vadd.f32 %v3054_v10, %v700_v34  ;;  %2381 = vmatprep.mubr.f32.mxu1 %v745_v30 }
 0x126   : > { %2382 = vmatmul.mubr.f32.gmra.mrb[26].mxu1 %v746_v32  ;;  %v748_v38 = vmax.f32 %v706_v33, 0.0 }
 0x127   : > { %v747_v36 = vmax.f32 %v701_v35, 0.0  ;;  %v2309_v37 = vpop.f32.mrb[30].mxu0 }
 0x128   : > { %v716_v39 = vadd.f32 %v2309_v37, %v3054_v10  ;;  %v710_v40 = vpop.f32.mrb[31].mxu0 }
 0x129   : > { %v711_v41 = vadd.f32 %v3054_v10, %v710_v40  ;;  %2384 = vmatprep.mubr.f32.mxu1 %v747_v36  ;;  %v1371_v10 = vld [vmem:[%s3498_s7 + $0x18] sm:$0xff] }
 0x12a   : > { %2385 = vmatmul.mubr.f32.gmra.mrb[28].mxu1 %v748_v38  ;;  %v750_v43 = vmax.f32 %v716_v39, 0.0  ;;  %v2594_v48 = vpack.c.bf16 %v1371_v10, %v1370_v46 }
 0x12b   : > { %v749_v42 = vmax.f32 %v711_v41, 0.0 }
 0x12c   : > { %2623 = vmatprep.subr.bf16.mxu1 %v2594_v48 }
 0x12d   : > { %2387 = vmatprep.mubr.f32.mxu1 %v749_v42  ;;  %2631 = vmatpush3.bf16.msra.mxu1 %v2594_v48 }
 0x12e   : > { %2388 = vmatmul.mubr.f32.gmra.mrb[30].mxu1 %v750_v43  ;;  %2624 = vmatprep.subr.bf16.mxu1 %v2598_v51 }
 0x131   : > { %2632 = vmatpush3.bf16.msra.mxu1 %v2598_v51 }
 0x132   : > { %2625 = vmatprep.subr.bf16.mxu1 %v2602_v54 }
 0x135   : > { %2633 = vmatpush3.bf16.msra.mxu1 %v2602_v54 }
 0x136   : > { %2626 = vmatprep.subr.bf16.mxu1 %v2606_v57 }
 0x139   : > { %2634 = vmatpush3.bf16.msra.mxu1 %v2606_v57 }
 0x13a   : > { %2627 = vmatprep.subr.bf16.mxu1 %v2610_v60 }
 0x13d   : > { %2635 = vmatpush3.bf16.msra.mxu1 %v2610_v60 }
 0x13e   : > { %2628 = vmatprep.subr.bf16.mxu1 %v3130_v63 }
 0x141   : > { %2636 = vmatpush3.bf16.msra.mxu1 %v3130_v63 }
 0x1c5   : > { %v2344_v1 = vpop.f32.mrb[0].mxu1 }
 0x1c6   : > { %v840_v2 = vpop.f32.mrb[1].mxu1  ;;  %v846_v4 = vadd.f32 %v2344_v1, %v3137_v0 }
 0x1c7   : > { %v841_v3 = vadd.f32 %v3137_v0, %v840_v2  ;;  %v1382_v2 = vld [vmem:[%s3498_s7 + $0x70] sm:$0xff] }
 0x1c9   : > { %v2347_v5 = vpop.f32.mrb[2].mxu1  ;;  %2406 = vmatprep.mubr.msk.f32.mxu0 %vm1014_vm1, %v841_v3  ;;  %v1383_v3 = vld [vmem:[%s3498_s7 + $0x78] sm:$0xff] }
 0x1ca   : > { %v850_v6 = vpop.f32.mrb[3].mxu1  ;;  %2407 = vmatmul.mubr.msk.f32.vlgmr.msra.gmra.mrb[32].mxu0 %vm1014_vm1, %v846_v4  ;;  %v856_v8 = vadd.f32 %v2347_v5, %v3137_v0  ;;  %v2618_v4 = vpack.c.bf16 %v1383_v3, %v1382_v2 }
 0x1cb   : > { %v851_v7 = vadd.f32 %v3137_v0, %v850_v6  ;;  %2593 = vmatpush3.bf16.msra.mxu0 %v2590_v47 }
 0x1cc   : > { %2595 = vmatprep.subr.bf16.mxu0 %v2594_v48  ;;  %2629 = vmatprep.subr.bf16.mxu1 %v2618_v4 }
 0x1cd   : > { %v2350_v9 = vpop.f32.mrb[4].mxu1  ;;  %2409 = vmatprep.mubr.msk.f32.mxu0 %vm1014_vm1, %v851_v7  ;;  %2637 = vmatpush3.bf16.msra.mxu1 %v2618_v4 }
 0x1ce   : > { %v860_v11 = vpop.f32.mrb[5].mxu1  ;;  %2410 = vmatmul.mubr.msk.f32.gmra.mrb[34].mxu0 %vm1014_vm1, %v856_v8  ;;  %v866_v13 = vadd.f32 %v2350_v9, %v3137_v0 }
 0x1cf   : > { %v861_v12 = vadd.f32 %v3137_v0, %v860_v11  ;;  %2597 = vmatpush3.bf16.msra.mxu0 %v2594_v48 }
 0x1d0   : > { %2599 = vmatprep.subr.bf16.mxu0 %v2598_v51 }
 0x1d1   : > { %v2353_v14 = vpop.f32.mrb[6].mxu1  ;;  %2412 = vmatprep.mubr.msk.f32.mxu0 %vm1014_vm1, %v861_v12 }
 0x1d2   : > { %v870_v15 = vpop.f32.mrb[7].mxu1  ;;  %2413 = vmatmul.mubr.msk.f32.gmra.mrb[36].mxu0 %vm1014_vm1, %v866_v13  ;;  %v876_v17 = vadd.f32 %v2353_v14, %v3137_v0 }
 0x1d3   : > { %v871_v16 = vadd.f32 %v3137_v0, %v870_v15  ;;  %2601 = vmatpush3.bf16.msra.mxu0 %v2598_v51 }
 0x1d4   : > { %2603 = vmatprep.subr.bf16.mxu0 %v2602_v54 }
 0x1d5   : > { %v2356_v18 = vpop.f32.mrb[8].mxu1  ;;  %2415 = vmatprep.mubr.msk.f32.mxu0 %vm1014_vm1, %v871_v16 }
 0x1d6   : > { %v880_v19 = vpop.f32.mrb[9].mxu1  ;;  %2416 = vmatmul.mubr.msk.f32.gmra.mrb[38].mxu0 %vm1014_vm1, %v876_v17  ;;  %v886_v21 = vadd.f32 %v2356_v18, %v3137_v0 }
 0x1d7   : > { %v881_v20 = vadd.f32 %v3137_v0, %v880_v19  ;;  %2605 = vmatpush3.bf16.msra.mxu0 %v2602_v54 }
 0x1d8   : > { %2607 = vmatprep.subr.bf16.mxu0 %v2606_v57 }
 0x1d9   : > { %v2359_v22 = vpop.f32.mrb[10].mxu1  ;;  %2418 = vmatprep.mubr.msk.f32.mxu0 %vm1014_vm1, %v881_v20 }
 0x1da   : > { %v890_v23 = vpop.f32.mrb[11].mxu1  ;;  %2419 = vmatmul.mubr.msk.f32.gmra.mrb[40].mxu0 %vm1014_vm1, %v886_v21  ;;  %v896_v25 = vadd.f32 %v2359_v22, %v3137_v0 }
 0x1db   : > { %v891_v24 = vadd.f32 %v3137_v0, %v890_v23  ;;  %2609 = vmatpush3.bf16.msra.mxu0 %v2606_v57 }
 0x1dc   : > { %2611 = vmatprep.subr.bf16.mxu0 %v2610_v60 }
 0x1dd   : > { %v2362_v26 = vpop.f32.mrb[12].mxu1  ;;  %2421 = vmatprep.mubr.msk.f32.mxu0 %vm1014_vm1, %v891_v24 }
 0x1de   : > { %v900_v27 = vpop.f32.mrb[13].mxu1  ;;  %2422 = vmatmul.mubr.msk.f32.gmra.mrb[42].mxu0 %vm1014_vm1, %v896_v25  ;;  %v906_v29 = vadd.f32 %v2362_v26, %v3137_v0 }
 0x1df   : > { %v901_v28 = vadd.f32 %v3137_v0, %v900_v27  ;;  %2613 = vmatpush3.bf16.msra.mxu0 %v2610_v60 }
 0x1e0   : > { %2615 = vmatprep.subr.bf16.mxu0 %v3130_v63 }
 0x1e1   : > { %v2365_v30 = vpop.f32.mrb[14].mxu1  ;;  %2424 = vmatprep.mubr.msk.f32.mxu0 %vm1014_vm1, %v901_v28 }
 0x1e2   : > { %v910_v31 = vpop.f32.mrb[15].mxu1  ;;  %2425 = vmatmul.mubr.msk.f32.gmra.mrb[44].mxu0 %vm1014_vm1, %v906_v29  ;;  %v916_v33 = vadd.f32 %v2365_v30, %v3137_v0 }
 0x1e3   : > { %v911_v32 = vadd.f32 %v3137_v0, %v910_v31  ;;  %2617 = vmatpush3.bf16.msra.mxu0 %v3130_v63 }
 0x1e4   : > { %2619 = vmatprep.subr.bf16.mxu0 %v2618_v4 }
 0x1e5   : > { %v2368_v34 = vpop.f32.mrb[16].mxu1  ;;  %2427 = vmatprep.mubr.msk.f32.mxu0 %vm1014_vm1, %v911_v32 }
 0x1e6   : > { %v920_v35 = vpop.f32.mrb[17].mxu1  ;;  %2428 = vmatmul.mubr.msk.f32.gmra.mrb[46].mxu0 %vm1014_vm1, %v916_v33  ;;  %v926_v37 = vadd.f32 %v2368_v34, %v3137_v0 }
 0x1e7   : > { %v921_v36 = vadd.f32 %v3137_v0, %v920_v35  ;;  %2621 = vmatpush3.bf16.msra.mxu0 %v2618_v4 }
 0x1e9   : > { %v2371_v38 = vpop.f32.mrb[18].mxu1  ;;  %2430 = vmatprep.mubr.msk.f32.mxu0 %vm1014_vm1, %v921_v36 }
 0x1ea   : > { %v930_v39 = vpop.f32.mrb[19].mxu1  ;;  %2431 = vmatmul.mubr.msk.f32.gmra.mrb[48].mxu0 %vm1014_vm1, %v926_v37  ;;  %v936_v41 = vadd.f32 %v2371_v38, %v3137_v0 }
 0x1eb   : > { %v931_v40 = vadd.f32 %v3137_v0, %v930_v39 }
 0x1ed   : > { %v2374_v42 = vpop.f32.mrb[20].mxu1  ;;  %2433 = vmatprep.mubr.msk.f32.mxu0 %vm1014_vm1, %v931_v40 }
 0x1ee   : > { %v940_v43 = vpop.f32.mrb[21].mxu1  ;;  %2434 = vmatmul.mubr.msk.f32.gmra.mrb[50].mxu0 %vm1014_vm1, %v936_v41  ;;  %v946_v45 = vadd.f32 %v2374_v42, %v3137_v0 }
 0x1ef   : > { %v941_v44 = vadd.f32 %v3137_v0, %v940_v43 }
 0x1f1   : > { %v2377_v46 = vpop.f32.mrb[22].mxu1  ;;  %2436 = vmatprep.mubr.msk.f32.mxu0 %vm1014_vm1, %v941_v44 }
 0x1f2   : > { %v950_v47 = vpop.f32.mrb[23].mxu1  ;;  %2437 = vmatmul.mubr.msk.f32.gmra.mrb[52].mxu0 %vm1014_vm1, %v946_v45  ;;  %v956_v48 = vadd.f32 %v2377_v46, %v3137_v0 }
 0x1f3   : > { %v951_v10 = vadd.f32 %v3137_v0, %v950_v47 }
 0x1f5   : > { %v2380_v49 = vpop.f32.mrb[24].mxu1  ;;  %2439 = vmatprep.mubr.msk.f32.mxu0 %vm1014_vm1, %v951_v10 }
 0x1f6   : > { %v960_v50 = vpop.f32.mrb[25].mxu1  ;;  %2440 = vmatmul.mubr.msk.f32.gmra.mrb[54].mxu0 %vm1014_vm1, %v956_v48  ;;  %v966_v52 = vadd.f32 %v2380_v49, %v3137_v0 }
 0x1f7   : > { %v961_v51 = vadd.f32 %v3137_v0, %v960_v50 }
 0x1f9   : > { %v2383_v53 = vpop.f32.mrb[26].mxu1  ;;  %2442 = vmatprep.mubr.msk.f32.mxu0 %vm1014_vm1, %v961_v51 }
 0x1fa   : > { %v970_v54 = vpop.f32.mrb[27].mxu1  ;;  %2443 = vmatmul.mubr.msk.f32.gmra.mrb[56].mxu0 %vm1014_vm1, %v966_v52  ;;  %v976_v56 = vadd.f32 %v2383_v53, %v3137_v0 }
 0x1fb   : > { %v971_v55 = vadd.f32 %v3137_v0, %v970_v54 }
 0x1fd   : > { %v2386_v57 = vpop.f32.mrb[28].mxu1  ;;  %2445 = vmatprep.mubr.msk.f32.mxu0 %vm1014_vm1, %v971_v55 }
 0x1fe   : > { %v980_v58 = vpop.f32.mrb[29].mxu1  ;;  %2446 = vmatmul.mubr.msk.f32.gmra.mrb[58].mxu0 %vm1014_vm1, %v976_v56  ;;  %v986_v60 = vadd.f32 %v2386_v57, %v3137_v0 }
 0x1ff   : > { %v981_v59 = vadd.f32 %v3137_v0, %v980_v58 }
 0x201   : > { %v2389_v61 = vpop.f32.mrb[30].mxu1  ;;  %2448 = vmatprep.mubr.msk.f32.mxu0 %vm1014_vm1, %v981_v59 }
 0x202   : > { %v990_v62 = vpop.f32.mrb[31].mxu1  ;;  %2449 = vmatmul.mubr.msk.f32.gmra.mrb[60].mxu0 %vm1014_vm1, %v986_v60  ;;  %v996_v1 = vadd.f32 %v2389_v61, %v3137_v0 }
 0x203   : > { %v991_v63 = vadd.f32 %v3137_v0, %v990_v62  ;;  %v3214_v0 = vld [vmem:[%s3497_s6] ss:$0 sm:$0xff] }
 0x205   : > { %2451 = vmatprep.mubr.msk.f32.mxu0 %vm1014_vm1, %v991_v63 }
 0x206   : > { %2452 = vmatmul.mubr.msk.f32.gmra.mrb[62].mxu0 %vm1014_vm1, %v996_v1 }
 0x29d   : > { %v2408_v5 = vpop.f32.mrb[32].mxu0 }
 0x29e   : > { %v1183_v6 = vadd.f32 %v2408_v5, %v3214_v0  ;;  %v1177_v7 = vpop.f32.mrb[33].mxu0 }
 0x29f   : > { %v1178_v8 = vadd.f32 %v3214_v0, %v1177_v7 }
 0x2a0   : > { %v1337_v12 = vmax.f32 %v1183_v6, 0.0 }
 0x2a1   : > { %v1336_v9 = vmax.f32 %v1178_v8, 0.0  ;;  %v2411_v11 = vpop.f32.mrb[34].mxu0 }
 0x2a2   : > { %v1193_v13 = vadd.f32 %v2411_v11, %v3214_v0  ;;  %v1187_v14 = vpop.f32.mrb[35].mxu0 }
 0x2a3   : > { %v1188_v15 = vadd.f32 %v3214_v0, %v1187_v14  ;;  %2486 = vmatprep.mubr.f32.mxu0 %v1336_v9 }
 0x2a4   : > { %2487 = vmatmul.mubr.f32.vlgmr.msra.gmra.mrb[64].mxu0 %v1337_v12  ;;  %v1339_v18 = vmax.f32 %v1193_v13, 0.0 }
 0x2a5   : > { %v1338_v16 = vmax.f32 %v1188_v15, 0.0  ;;  %v2414_v17 = vpop.f32.mrb[36].mxu0 }
 0x2a6   : > { %v1203_v19 = vadd.f32 %v2414_v17, %v3214_v0  ;;  %v1197_v20 = vpop.f32.mrb[37].mxu0 }
 0x2a7   : > { %v1198_v21 = vadd.f32 %v3214_v0, %v1197_v20  ;;  %2489 = vmatprep.mubr.f32.mxu0 %v1338_v16 }
 0x2a8   : > { %2490 = vmatmul.mubr.f32.gmra.mrb[66].mxu0 %v1339_v18  ;;  %v1341_v24 = vmax.f32 %v1203_v19, 0.0 }
 0x2a9   : > { %v1340_v22 = vmax.f32 %v1198_v21, 0.0  ;;  %v2417_v23 = vpop.f32.mrb[38].mxu0 }
 0x2aa   : > { %v1213_v25 = vadd.f32 %v2417_v23, %v3214_v0  ;;  %v1207_v26 = vpop.f32.mrb[39].mxu0 }
 0x2ab   : > { %v1208_v27 = vadd.f32 %v3214_v0, %v1207_v26  ;;  %2492 = vmatprep.mubr.f32.mxu0 %v1340_v22 }
 0x2ac   : > { %2493 = vmatmul.mubr.f32.gmra.mrb[68].mxu0 %v1341_v24  ;;  %v1343_v30 = vmax.f32 %v1213_v25, 0.0 }
 0x2ad   : > { %v1342_v28 = vmax.f32 %v1208_v27, 0.0  ;;  %v2420_v29 = vpop.f32.mrb[40].mxu0 }
 0x2ae   : > { %v1223_v31 = vadd.f32 %v2420_v29, %v3214_v0  ;;  %v1217_v32 = vpop.f32.mrb[41].mxu0 }
 0x2af   : > { %v1218_v33 = vadd.f32 %v3214_v0, %v1217_v32  ;;  %2495 = vmatprep.mubr.f32.mxu1 %v1342_v28 }
 0x2b0   : > { %2496 = vmatmul.mubr.f32.vlgmr.msra.gmra.mrb[32].mxu1 %v1343_v30  ;;  %v1345_v36 = vmax.f32 %v1223_v31, 0.0 }
 0x2b1   : > { %v1344_v34 = vmax.f32 %v1218_v33, 0.0  ;;  %v2423_v35 = vpop.f32.mrb[42].mxu0 }
 0x2b2   : > { %v1233_v37 = vadd.f32 %v2423_v35, %v3214_v0  ;;  %v1227_v38 = vpop.f32.mrb[43].mxu0 }
 0x2b3   : > { %v1228_v39 = vadd.f32 %v3214_v0, %v1227_v38  ;;  %2498 = vmatprep.mubr.f32.mxu1 %v1344_v34 }
 0x2b4   : > { %2499 = vmatmul.mubr.f32.gmra.mrb[34].mxu1 %v1345_v36  ;;  %v1347_v42 = vmax.f32 %v1233_v37, 0.0 }
 0x2b5   : > { %v1346_v40 = vmax.f32 %v1228_v39, 0.0  ;;  %v2426_v41 = vpop.f32.mrb[44].mxu0  ;;  %v3252_v39 = vld [vmem:[%s3499_s8] ss:$0 sm:$0xff] }
 0x2b6   : > { %v1243_v43 = vadd.f32 %v2426_v41, %v3214_v0  ;;  %v1237_v44 = vpop.f32.mrb[45].mxu0 }
 0x2b7   : > { %v1238_v45 = vadd.f32 %v3214_v0, %v1237_v44  ;;  %2501 = vmatprep.mubr.f32.mxu1 %v1346_v40 }
 0x2b8   : > { %2502 = vmatmul.mubr.f32.gmra.mrb[36].mxu1 %v1347_v42  ;;  %v1349_v10 = vmax.f32 %v1243_v43, 0.0 }
 0x2b9   : > { %v1348_v46 = vmax.f32 %v1238_v45, 0.0  ;;  %v2429_v47 = vpop.f32.mrb[46].mxu0 }
 0x2ba   : > { %v1253_v48 = vadd.f32 %v2429_v47, %v3214_v0  ;;  %v1247_v49 = vpop.f32.mrb[47].mxu0 }
 0x2bb   : > { %v1248_v50 = vadd.f32 %v3214_v0, %v1247_v49  ;;  %2504 = vmatprep.mubr.f32.mxu1 %v1348_v46 }
 0x2bc   : > { %2505 = vmatmul.mubr.f32.gmra.mrb[38].mxu1 %v1349_v10  ;;  %v1351_v53 = vmax.f32 %v1253_v48, 0.0 }
 0x2bd   : > { %v1350_v51 = vmax.f32 %v1248_v50, 0.0  ;;  %v2432_v52 = vpop.f32.mrb[48].mxu0 }
 0x2be   : > { %v1263_v54 = vadd.f32 %v2432_v52, %v3214_v0  ;;  %v1257_v55 = vpop.f32.mrb[49].mxu0 }
 0x2bf   : > { %v1258_v56 = vadd.f32 %v3214_v0, %v1257_v55  ;;  %2507 = vmatprep.mubr.f32.mxu1 %v1350_v51 }
 0x2c0   : > { %2508 = vmatmul.mubr.f32.gmra.mrb[40].mxu1 %v1351_v53  ;;  %v1353_v59 = vmax.f32 %v1263_v54, 0.0 }
 0x2c1   : > { %v1352_v57 = vmax.f32 %v1258_v56, 0.0  ;;  %v2435_v58 = vpop.f32.mrb[50].mxu0 }
 0x2c2   : > { %v1273_v60 = vadd.f32 %v2435_v58, %v3214_v0  ;;  %v1267_v61 = vpop.f32.mrb[51].mxu0 }
 0x2c3   : > { %v1268_v62 = vadd.f32 %v3214_v0, %v1267_v61  ;;  %2510 = vmatprep.mubr.f32.mxu1 %v1352_v57 }
 0x2c4   : > { %2511 = vmatmul.mubr.f32.gmra.mrb[42].mxu1 %v1353_v59  ;;  %v1355_v2 = vmax.f32 %v1273_v60, 0.0 }
 0x2c5   : > { %v1354_v63 = vmax.f32 %v1268_v62, 0.0  ;;  %v2438_v1 = vpop.f32.mrb[52].mxu0 }
 0x2c6   : > { %v1283_v3 = vadd.f32 %v2438_v1, %v3214_v0  ;;  %v1277_v4 = vpop.f32.mrb[53].mxu0 }
 0x2c7   : > { %v1278_v5 = vadd.f32 %v3214_v0, %v1277_v4  ;;  %2513 = vmatprep.mubr.f32.mxu1 %v1354_v63 }
 0x2c8   : > { %2514 = vmatmul.mubr.f32.gmra.mrb[44].mxu1 %v1355_v2  ;;  %v1357_v8 = vmax.f32 %v1283_v3, 0.0 }
 0x2c9   : > { %v1356_v6 = vmax.f32 %v1278_v5, 0.0  ;;  %v2441_v7 = vpop.f32.mrb[54].mxu0 }
 0x2ca   : > { %v1293_v9 = vadd.f32 %v2441_v7, %v3214_v0  ;;  %v1287_v11 = vpop.f32.mrb[55].mxu0 }
 0x2cb   : > { %v1288_v12 = vadd.f32 %v3214_v0, %v1287_v11  ;;  %2516 = vmatprep.mubr.f32.mxu1 %v1356_v6 }
 0x2cc   : > { %2517 = vmatmul.mubr.f32.gmra.mrb[46].mxu1 %v1357_v8  ;;  %v1359_v15 = vmax.f32 %v1293_v9, 0.0 }
 0x2cd   : > { %v1358_v13 = vmax.f32 %v1288_v12, 0.0  ;;  %v2444_v14 = vpop.f32.mrb[56].mxu0 }
 0x2ce   : > { %v1303_v16 = vadd.f32 %v2444_v14, %v3214_v0  ;;  %v1297_v17 = vpop.f32.mrb[57].mxu0 }
 0x2cf   : > { %v1298_v18 = vadd.f32 %v3214_v0, %v1297_v17  ;;  %2519 = vmatprep.mubr.f32.mxu1 %v1358_v13 }
 0x2d0   : > { %2520 = vmatmul.mubr.f32.gmra.mrb[48].mxu1 %v1359_v15  ;;  %v1361_v21 = vmax.f32 %v1303_v16, 0.0 }
 0x2d1   : > { %v1360_v19 = vmax.f32 %v1298_v18, 0.0  ;;  %v2447_v20 = vpop.f32.mrb[58].mxu0 }
 0x2d2   : > { %v1313_v22 = vadd.f32 %v2447_v20, %v3214_v0  ;;  %v1307_v23 = vpop.f32.mrb[59].mxu0 }
 0x2d3   : > { %v1308_v24 = vadd.f32 %v3214_v0, %v1307_v23  ;;  %2522 = vmatprep.mubr.f32.mxu1 %v1360_v19 }
 0x2d4   : > { %2523 = vmatmul.mubr.f32.gmra.mrb[50].mxu1 %v1361_v21  ;;  %v1363_v27 = vmax.f32 %v1313_v22, 0.0 }
 0x2d5   : > { %v1362_v25 = vmax.f32 %v1308_v24, 0.0  ;;  %v2450_v26 = vpop.f32.mrb[60].mxu0 }
 0x2d6   : > { %v1323_v28 = vadd.f32 %v2450_v26, %v3214_v0  ;;  %v1317_v29 = vpop.f32.mrb[61].mxu0 }
 0x2d7   : > { %v1318_v30 = vadd.f32 %v3214_v0, %v1317_v29  ;;  %2525 = vmatprep.mubr.f32.mxu1 %v1362_v25 }
 0x2d8   : > { %2526 = vmatmul.mubr.f32.gmra.mrb[52].mxu1 %v1363_v27  ;;  %v1365_v33 = vmax.f32 %v1323_v28, 0.0 }
 0x2d9   : > { %v1364_v31 = vmax.f32 %v1318_v30, 0.0  ;;  %v2453_v32 = vpop.f32.mrb[62].mxu0 }
 0x2da   : > { %v1333_v34 = vadd.f32 %v2453_v32, %v3214_v0  ;;  %v1327_v35 = vpop.f32.mrb[63].mxu0 }
 0x2db   : > { %v1328_v36 = vadd.f32 %v3214_v0, %v1327_v35  ;;  %2528 = vmatprep.mubr.f32.mxu1 %v1364_v31 }
 0x2dc   : > { %2529 = vmatmul.mubr.f32.gmra.mrb[54].mxu1 %v1365_v33  ;;  %v1367_v38 = vmax.f32 %v1333_v34, 0.0 }
 0x2dd   : > { %v1366_v37 = vmax.f32 %v1328_v36, 0.0 }
 0x2df   : > { %2531 = vmatprep.mubr.f32.mxu1 %v1366_v37 }
 0x2e0   : > { %2532 = vmatmul.mubr.f32.gmra.mrb[56].mxu1 %v1367_v38 }
 0x377   : > { %v2488_v40 = vpop.f32.mrb[64].mxu0 }
 0x378   : > { %v1463_v41 = vadd.f32 %v2488_v40, %v3252_v39  ;;  %v1457_v42 = vpop.f32.mrb[65].mxu0 }
 0x379   : > { %v1458_v43 = vadd.f32 %v3252_v39, %v1457_v42 }
 0x37a   : > { %1617 = vst.msk [vmem:[%s3256_s25 + $0x8] sm:$0xff] %vm397_vm0, %v1463_v41 }
 0x37b   : > { %1616 = vst.msk [vmem:[%s3256_s25] sm:$0xff] %vm397_vm0, %v1458_v43  ;;  %v2491_v0 = vpop.f32.mrb[66].mxu0 }
 0x37c   : > { %v1473_v44 = vadd.f32 %v2491_v0, %v3252_v39  ;;  %v1467_v45 = vpop.f32.mrb[67].mxu0 }
 0x37d   : > { %v1468_v46 = vadd.f32 %v3252_v39, %v1467_v45 }
 0x37e   : > { %1619 = vst.msk [vmem:[%s3256_s25 + $0x18] sm:$0xff] %vm397_vm0, %v1473_v44 }
 0x37f   : > { %1618 = vst.msk [vmem:[%s3256_s25 + $0x10] sm:$0xff] %vm397_vm0, %v1468_v46  ;;  %v2494_v47 = vpop.f32.mrb[68].mxu0 }
 0x380   : > { %v1483_v10 = vadd.f32 %v2494_v47, %v3252_v39  ;;  %v1477_v48 = vpop.f32.mrb[69].mxu0 }
 0x381   : > { %v1478_v49 = vadd.f32 %v3252_v39, %v1477_v48 }
 0x382   : > { %1621 = vst.msk [vmem:[%s3256_s25 + $0x28] sm:$0xff] %vm397_vm0, %v1483_v10 }
 0x383   : > { %1620 = vst.msk [vmem:[%s3256_s25 + $0x20] sm:$0xff] %vm397_vm0, %v1478_v49  ;;  %v2497_v50 = vpop.f32.mrb[32].mxu1 }
 0x384   : > { %v1493_v51 = vadd.f32 %v2497_v50, %v3252_v39  ;;  %v1487_v52 = vpop.f32.mrb[33].mxu1 }
 0x385   : > { %v1488_v53 = vadd.f32 %v3252_v39, %v1487_v52 }
 0x386   : > { %1623 = vst.msk [vmem:[%s3256_s25 + $0x38] sm:$0xff] %vm397_vm0, %v1493_v51 }
 0x387   : > { %1622 = vst.msk [vmem:[%s3256_s25 + $0x30] sm:$0xff] %vm397_vm0, %v1488_v53  ;;  %v2500_v54 = vpop.f32.mrb[34].mxu1 }
 0x388   : > { %v1503_v55 = vadd.f32 %v2500_v54, %v3252_v39  ;;  %v1497_v56 = vpop.f32.mrb[35].mxu1 }
 0x389   : > { %v1498_v57 = vadd.f32 %v3252_v39, %v1497_v56 }
 0x38a   : > { %1625 = vst.msk [vmem:[%s3256_s25 + $0x48] sm:$0xff] %vm397_vm0, %v1503_v55 }
 0x38b   : > { %1624 = vst.msk [vmem:[%s3256_s25 + $0x40] sm:$0xff] %vm397_vm0, %v1498_v57  ;;  %v2503_v58 = vpop.f32.mrb[36].mxu1 }
 0x38c   : > { %v1513_v59 = vadd.f32 %v2503_v58, %v3252_v39  ;;  %v1507_v60 = vpop.f32.mrb[37].mxu1 }
 0x38d   : > { %v1508_v61 = vadd.f32 %v3252_v39, %v1507_v60 }
 0x38e   : > { %1627 = vst.msk [vmem:[%s3256_s25 + $0x58] sm:$0xff] %vm397_vm0, %v1513_v59 }
 0x38f   : > { %1626 = vst.msk [vmem:[%s3256_s25 + $0x50] sm:$0xff] %vm397_vm0, %v1508_v61  ;;  %v2506_v62 = vpop.f32.mrb[38].mxu1 }
 0x390   : > { %v1523_v63 = vadd.f32 %v2506_v62, %v3252_v39  ;;  %v1517_v1 = vpop.f32.mrb[39].mxu1 }
 0x391   : > { %v1518_v2 = vadd.f32 %v3252_v39, %v1517_v1 }
 0x392   : > { %1629 = vst.msk [vmem:[%s3256_s25 + $0x68] sm:$0xff] %vm397_vm0, %v1523_v63 }
 0x393   : > { %1628 = vst.msk [vmem:[%s3256_s25 + $0x60] sm:$0xff] %vm397_vm0, %v1518_v2  ;;  %v2509_v3 = vpop.f32.mrb[40].mxu1 }
 0x394   : > { %v1533_v4 = vadd.f32 %v2509_v3, %v3252_v39  ;;  %v1527_v5 = vpop.f32.mrb[41].mxu1 }
 0x395   : > { %v1528_v6 = vadd.f32 %v3252_v39, %v1527_v5 }
 0x396   : > { %1631 = vst.msk [vmem:[%s3256_s25 + $0x78] sm:$0xff] %vm397_vm0, %v1533_v4 }
 0x397   : > { %1630 = vst.msk [vmem:[%s3256_s25 + $0x70] sm:$0xff] %vm397_vm0, %v1528_v6  ;;  %v2512_v7 = vpop.f32.mrb[42].mxu1 }
 0x398   : > { %v1543_v8 = vadd.f32 %v2512_v7, %v3252_v39  ;;  %v1537_v9 = vpop.f32.mrb[43].mxu1 }
 0x399   : > { %v1538_v11 = vadd.f32 %v3252_v39, %v1537_v9 }
 0x39a   : > { %1633 = vst.msk [vmem:[%s3256_s25 + $0x88] sm:$0xff] %vm397_vm0, %v1543_v8 }
 0x39b   : > { %1632 = vst.msk [vmem:[%s3256_s25 + $0x80] sm:$0xff] %vm397_vm0, %v1538_v11  ;;  %v2515_v12 = vpop.f32.mrb[44].mxu1 }
 0x39c   : > { %v1553_v13 = vadd.f32 %v2515_v12, %v3252_v39  ;;  %v1547_v14 = vpop.f32.mrb[45].mxu1 }
 0x39d   : > { %v1548_v15 = vadd.f32 %v3252_v39, %v1547_v14 }
 0x39e   : > { %1635 = vst.msk [vmem:[%s3256_s25 + $0x98] sm:$0xff] %vm397_vm0, %v1553_v13 }
 0x39f   : > { %1634 = vst.msk [vmem:[%s3256_s25 + $0x90] sm:$0xff] %vm397_vm0, %v1548_v15  ;;  %v2518_v16 = vpop.f32.mrb[46].mxu1 }
 0x3a0   : > { %v1563_v17 = vadd.f32 %v2518_v16, %v3252_v39  ;;  %v1557_v18 = vpop.f32.mrb[47].mxu1 }
 0x3a1   : > { %v1558_v19 = vadd.f32 %v3252_v39, %v1557_v18 }
 0x3a2   : > { %1637 = vst.msk [vmem:[%s3256_s25 + $0xa8] sm:$0xff] %vm397_vm0, %v1563_v17 }
 0x3a3   : > { %1636 = vst.msk [vmem:[%s3256_s25 + $0xa0] sm:$0xff] %vm397_vm0, %v1558_v19  ;;  %v2521_v20 = vpop.f32.mrb[48].mxu1 }
 0x3a4   : > { %v1573_v21 = vadd.f32 %v2521_v20, %v3252_v39  ;;  %v1567_v22 = vpop.f32.mrb[49].mxu1 }
 0x3a5   : > { %v1568_v23 = vadd.f32 %v3252_v39, %v1567_v22 }
 0x3a6   : > { %1639 = vst.msk [vmem:[%s3256_s25 + $0xb8] sm:$0xff] %vm397_vm0, %v1573_v21 }
 0x3a7   : > { %1638 = vst.msk [vmem:[%s3256_s25 + $0xb0] sm:$0xff] %vm397_vm0, %v1568_v23  ;;  %v2524_v24 = vpop.f32.mrb[50].mxu1 }
 0x3a8   : > { %v1583_v25 = vadd.f32 %v2524_v24, %v3252_v39  ;;  %v1577_v26 = vpop.f32.mrb[51].mxu1 }
 0x3a9   : > { %v1578_v27 = vadd.f32 %v3252_v39, %v1577_v26 }
 0x3aa   : > { %1641 = vst.msk [vmem:[%s3256_s25 + $0xc8] sm:$0xff] %vm397_vm0, %v1583_v25 }
 0x3ab   : > { %1640 = vst.msk [vmem:[%s3256_s25 + $0xc0] sm:$0xff] %vm397_vm0, %v1578_v27  ;;  %v2527_v28 = vpop.f32.mrb[52].mxu1 }
 0x3ac   : > { %v1593_v29 = vadd.f32 %v2527_v28, %v3252_v39  ;;  %v1587_v30 = vpop.f32.mrb[53].mxu1 }
 0x3ad   : > { %v1588_v31 = vadd.f32 %v3252_v39, %v1587_v30 }
 0x3ae   : > { %1643 = vst.msk [vmem:[%s3256_s25 + $0xd8] sm:$0xff] %vm397_vm0, %v1593_v29 }
 0x3af   : > { %1642 = vst.msk [vmem:[%s3256_s25 + $0xd0] sm:$0xff] %vm397_vm0, %v1588_v31  ;;  %v2530_v32 = vpop.f32.mrb[54].mxu1 }
 0x3b0   : > { %v1603_v33 = vadd.f32 %v2530_v32, %v3252_v39  ;;  %v1597_v34 = vpop.f32.mrb[55].mxu1 }
 0x3b1   : > { %v1598_v35 = vadd.f32 %v3252_v39, %v1597_v34  ;;  %1654 = sbr.rel (!%p2889_p4) target bundleno = 1008 (0x3f0), region = 60 }
 0x3b2   : > { %1645 = vst.msk [vmem:[%s3256_s25 + $0xe8] sm:$0xff] %vm397_vm0, %v1603_v33 }
 0x3b3   : > { %1644 = vst.msk [vmem:[%s3256_s25 + $0xe0] sm:$0xff] %vm397_vm0, %v1598_v35  ;;  %v2533_v36 = vpop.f32.mrb[56].mxu1 }
 0x3b4   : > { %v1613_v37 = vadd.f32 %v2533_v36, %v3252_v39  ;;  %v1607_v38 = vpop.f32.mrb[57].mxu1 }
 0x3b5   : > { %v1608_v40 = vadd.f32 %v3252_v39, %v1607_v38 }
 0x3b6   : > { %1647 = vst.msk [vmem:[%s3256_s25 + $0xf8] sm:$0xff] %vm397_vm0, %v1613_v37 }
 0x3b7   : > { %1646 = vst.msk [vmem:[%s3256_s25 + $0xf0] sm:$0xff] %vm397_vm0, %v1608_v40 }
 0x3b8   : > { %s3511_s30 = smov (!%p1657_p8, %s1656_s30), 32 }
 0x3b9   : > { %s2064_s11 = sshll.u32 %s3511_s30, 7 }
 0x3ba   : > { %p2067_p9 = scmp.eq.s32.totalorder %s2064_s11, 0 }
 0x3bb   : > { %s3365_s14 = sshrl.u32 (!%p2067_p9), %s3511_s30, 5 }
 0x3bc   : > { %1665 = sbr.rel (%p2067_p9) target bundleno = 1008 (0x3f0), region = 64  ;;  %p2068_p10 = scmp.le.s32.totalorder (!%p2067_p9), %s3365_s14, 0 }
 0x3c3   : > { %1943 = sbr.rel (%p2068_p10) target bundleno = 987 (0x3db), region = 140  ;;  %s3502_s12 = smov (!%p2068_p10), %s3359_s28 }
 0x3c4   : > { %s3503_s17 = smov (!%p2068_p10), %s3256_s25  ;;  %s3374_s24 = smov (!%p2068_p10), 0  }
 0x3c5   : > { %s3376_s15 = smov (!%p2068_p10), 0  }
 0x3ca LB: >> { %v1789_v39 = vld [vmem:[%s2788_s17] sm:$0xff]  ;;  %v1791_v41 = vld [vmem:[%s2788_s17 + $0x8] sm:$0xff]  ;;  %v1793_v42 = vld [vmem:[%s2788_s17 + $0x10] sm:$0xff]  ;;  %s1853_s18 = sadd.s32 1, %s2792_s24  ;;  %s1783_s15 = sadd.s32 1, %s2796_s15   ;;  %s2796_s15 = sphi %s3376_s15, %s1783_s15   ;;  %s2792_s24 = sphi %s3374_s24, %s3506_s24   ;;  %s2788_s17 = sphi %s3503_s17, %s3505_s17   ;;  %s2784_s12 = sphi %s3502_s12, %s3504_s12  }
 0x3cb   : >> { %1790 = vst [vmem:[%s2784_s12] sm:$0xff] %v1789_v39  ;;  %1792 = vst [vmem:[%s2784_s12 + $0x8] sm:$0xff] %v1791_v41  ;;  %v1795_v43 = vld [vmem:[%s2788_s17 + $0x18] sm:$0xff]  ;;  %v1797_v0 = vld [vmem:[%s2788_s17 + $0x20] sm:$0xff]  ;;  %p1854_p11 = scmp.ge.s32.totalorder %s1853_s18, %s3365_s14  ;;  %p1782_p12 = scmp.ge.s32.totalorder %s1783_s15, %s3365_s14 }
 0x3cc   : >> { %1794 = vst [vmem:[%s2784_s12 + $0x10] sm:$0xff] %v1793_v42  ;;  %v1799_v44 = vld [vmem:[%s2788_s17 + $0x28] sm:$0xff]  ;;  %1796 = vst [vmem:[%s2784_s12 + $0x18] sm:$0xff] %v1795_v43  ;;  %v1801_v45 = vld [vmem:[%s2788_s17 + $0x30] sm:$0xff] }
 0x3cd   : >> { %1798 = vst [vmem:[%s2784_s12 + $0x20] sm:$0xff] %v1797_v0  ;;  %1800 = vst [vmem:[%s2784_s12 + $0x28] sm:$0xff] %v1799_v44  ;;  %v1803_v46 = vld [vmem:[%s2788_s17 + $0x38] sm:$0xff]  ;;  %v1805_v47 = vld [vmem:[%s2788_s17 + $0x40] sm:$0xff]  ;;  %s3513_s18 = smov (%p1854_p11, %s1853_s18), 0 }
 0x3ce   : >> { %1802 = vst [vmem:[%s2784_s12 + $0x30] sm:$0xff] %v1801_v45  ;;  %1804 = vst [vmem:[%s2784_s12 + $0x38] sm:$0xff] %v1803_v46  ;;  %v1807_v10 = vld [vmem:[%s2788_s17 + $0x48] sm:$0xff]  ;;  %v1809_v48 = vld [vmem:[%s2788_s17 + $0x50] sm:$0xff]  ;;  %s2069_s19 = sshll.u32 %s3513_s18, 8  ;;  %s3506_s24 = smov %s3513_s18 }
 0x3cf   : >> { %1806 = vst [vmem:[%s2784_s12 + $0x40] sm:$0xff] %v1805_v47  ;;  %v1811_v49 = vld [vmem:[%s2788_s17 + $0x58] sm:$0xff]  ;;  %1808 = vst [vmem:[%s2784_s12 + $0x48] sm:$0xff] %v1807_v10  ;;  %v1813_v50 = vld [vmem:[%s2788_s17 + $0x60] sm:$0xff]  ;;  %s3432_s20 = scalar_lea.vmem %s3256_s25, %s2069_s19 [#allocation2]   ;;  %s1859_s21 = scalar_lea.vmem %s3359_s28, %s2069_s19  }
 0x3d0   : >> { %1810 = vst [vmem:[%s2784_s12 + $0x50] sm:$0xff] %v1809_v48  ;;  %1812 = vst [vmem:[%s2784_s12 + $0x58] sm:$0xff] %v1811_v49  ;;  %v1815_v51 = vld [vmem:[%s2788_s17 + $0x68] sm:$0xff]  ;;  %v1817_v52 = vld [vmem:[%s2788_s17 + $0x70] sm:$0xff] }
 0x3d1   : >> { %1814 = vst [vmem:[%s2784_s12 + $0x60] sm:$0xff] %v1813_v50  ;;  %1816 = vst [vmem:[%s2784_s12 + $0x68] sm:$0xff] %v1815_v51  ;;  %v1819_v53 = vld [vmem:[%s2788_s17 + $0x78] sm:$0xff]  ;;  %v1821_v54 = vld [vmem:[%s2788_s17 + $0x80] sm:$0xff] }
 0x3d2   : >> { %1818 = vst [vmem:[%s2784_s12 + $0x70] sm:$0xff] %v1817_v52  ;;  %v1823_v55 = vld [vmem:[%s2788_s17 + $0x88] sm:$0xff]  ;;  %1820 = vst [vmem:[%s2784_s12 + $0x78] sm:$0xff] %v1819_v53  ;;  %v1825_v56 = vld [vmem:[%s2788_s17 + $0x90] sm:$0xff] }
 0x3d3   : >> { %1822 = vst [vmem:[%s2784_s12 + $0x80] sm:$0xff] %v1821_v54  ;;  %1824 = vst [vmem:[%s2784_s12 + $0x88] sm:$0xff] %v1823_v55  ;;  %v1827_v57 = vld [vmem:[%s2788_s17 + $0x98] sm:$0xff]  ;;  %v1829_v58 = vld [vmem:[%s2788_s17 + $0xa0] sm:$0xff] }
 0x3d4   : >> { %1826 = vst [vmem:[%s2784_s12 + $0x90] sm:$0xff] %v1825_v56  ;;  %1828 = vst [vmem:[%s2784_s12 + $0x98] sm:$0xff] %v1827_v57  ;;  %v1831_v59 = vld [vmem:[%s2788_s17 + $0xa8] sm:$0xff]  ;;  %v1833_v60 = vld [vmem:[%s2788_s17 + $0xb0] sm:$0xff]  ;;  %1785 = sbr.rel (!%p1782_p12) target bundleno = 970 (0x3ca), region = 146 }
 0x3d5   : >> { %1830 = vst [vmem:[%s2784_s12 + $0xa0] sm:$0xff] %v1829_v58  ;;  %v1835_v61 = vld [vmem:[%s2788_s17 + $0xb8] sm:$0xff]  ;;  %1832 = vst [vmem:[%s2784_s12 + $0xa8] sm:$0xff] %v1831_v59  ;;  %v1837_v62 = vld [vmem:[%s2788_s17 + $0xc0] sm:$0xff] }
 0x3d6   : >> { %1834 = vst [vmem:[%s2784_s12 + $0xb0] sm:$0xff] %v1833_v60  ;;  %1836 = vst [vmem:[%s2784_s12 + $0xb8] sm:$0xff] %v1835_v61  ;;  %v1839_v63 = vld [vmem:[%s2788_s17 + $0xc8] sm:$0xff]  ;;  %v1841_v1 = vld [vmem:[%s2788_s17 + $0xd0] sm:$0xff] }
 0x3d7   : >> { %1838 = vst [vmem:[%s2784_s12 + $0xc0] sm:$0xff] %v1837_v62  ;;  %1840 = vst [vmem:[%s2784_s12 + $0xc8] sm:$0xff] %v1839_v63  ;;  %v1843_v2 = vld [vmem:[%s2788_s17 + $0xd8] sm:$0xff]  ;;  %v1845_v3 = vld [vmem:[%s2788_s17 + $0xe0] sm:$0xff] }
 0x3d8   : >> { %1842 = vst [vmem:[%s2784_s12 + $0xd0] sm:$0xff] %v1841_v1  ;;  %v1847_v4 = vld [vmem:[%s2788_s17 + $0xe8] sm:$0xff]  ;;  %1844 = vst [vmem:[%s2784_s12 + $0xd8] sm:$0xff] %v1843_v2  ;;  %v1849_v5 = vld [vmem:[%s2788_s17 + $0xf0] sm:$0xff] }
 0x3d9   : >> { %1846 = vst [vmem:[%s2784_s12 + $0xe0] sm:$0xff] %v1845_v3  ;;  %1848 = vst [vmem:[%s2784_s12 + $0xe8] sm:$0xff] %v1847_v4  ;;  %v1851_v6 = vld [vmem:[%s2788_s17 + $0xf8] sm:$0xff]  ;;  %s3505_s17 = smov %s3432_s20 }
 0x3da   : >> { %1850 = vst [vmem:[%s2784_s12 + $0xf0] sm:$0xff] %v1849_v5  ;;  %1852 = vst [vmem:[%s2784_s12 + $0xf8] sm:$0xff] %v1851_v6  ;;  %s3504_s12 = smov %s1859_s21 }
 0x3db PF: > { %s3473_s22 = sand.u32 31, %s3511_s30   ;;  %s2080_s23 = sshll.u32 %s3365_s14, 8 }
 0x3dc   : > { %s1864_s26 = scalar_lea.vmem %s3256_s25, %s2080_s23 [#allocation2]   ;;  %s1866_s29 = scalar_lea.vmem %s3359_s28, %s2080_s23  }
 0x3dd   : > { %p2074_p13 = scmp.le.s32.totalorder %s3473_s22, 0 }
 0x3de   : > { %s2798_s27 = smov (!%p2074_p13), %s1866_s29   ;;  %s2802_s11 = smov (!%p2074_p13), %s1864_s26  }
 0x3df   : > { %1957 = sbr.rel (%p2074_p13) target bundleno = 1008 (0x3f0), region = 151  ;;  %s2806_s19 = smov (!%p2074_p13), 0  }
 0x3e0   : > { %s2810_s18 = smov (!%p2074_p13), 0  }
 0x3e6 LB: >> { %v1876_v7 = vld [vmem:[%s2804_s11] sm:$0xff]  ;;  %s1878_s30 = sadd.s32 1, %s2808_s19  ;;  %s1870_s18 = sadd.s32 1, %s2812_s18   ;;  %s2812_s18 = sphi %s2810_s18, %s1870_s18   ;;  %s2808_s19 = sphi %s2806_s19, %s2807_s19   ;;  %s2804_s11 = sphi %s2802_s11, %s1883_s11   ;;  %s2800_s27 = sphi %s2798_s27, %s1884_s27  }
 0x3e7   : >> { %1877 = vst [vmem:[%s2800_s27] sm:$0xff] %v1876_v7  ;;  %p1879_p0 = scmp.ge.s32.totalorder %s1878_s30, %s3473_s22  ;;  %p1869_p1 = scmp.ge.s32.totalorder %s1870_s18, %s3473_s22 }
 0x3e9   : >> { %s3515_s30 = smov (%p1879_p0, %s1878_s30), 0  ;;  %1872 = sbr.rel (!%p1869_p1) target bundleno = 998 (0x3e6), region = 157 }
 0x3ea   : >> { %s2075_s25 = sshll.u32 %s3515_s30, 3  ;;  %s2807_s19 = smov %s3515_s30  }
 0x3eb   : >> { %s1883_s11 = scalar_lea.vmem %s1864_s26, %s2075_s25 [#allocation2]   ;;  %s1884_s27 = scalar_lea.vmem %s1866_s29, %s2075_s25  }
 0x3f0 PF: > { %p16_p2 = scmp.ge.s32.totalorder %s2879_s13, 4   ;;  %s3507_s30 = smov %s2776_s10 }
 0x3f1   : > { %s3508_s10 = smov %s2887_s16  ;;  %s3509_s11 = smov %s2879_s13 }
 0x3f2   :  { %18 = sbr.rel (!%p16_p2) target bundleno = 2 (0x2), region = 168 }

</bundles_post_ra>
